<compile_context>
chip_gen: v7x
topology: tpu7x:2x2x1
jax: 0.10.0
libtpu: 0.0.40
codegen_flags: <defaults>
</compile_context>

<pallas_src>
import jax
import jax.numpy as jnp
from jax import lax
from jax.experimental import pallas as pl
from jax.experimental.pallas import tpu as pltpu


def _k_tiling(feat, max_tk=512):
    """Pick the K tile (multiple of 128) and padded K for the first matmul."""
    feat128 = ((feat + 127) // 128) * 128
    tk = min(max_tk, feat128)
    feat_pad = ((feat + tk - 1) // tk) * tk
    return feat_pad, tk, feat_pad // tk


def aux_head_kernel(x_ref, wpc_ref, b1_ref, w2_ref, wl_ref, bl_ref,
                    out_ref, acc_ref):
    k = pl.program_id(1)

    @pl.when(k == 0)
    def _():
        acc_ref[...] = jnp.zeros_like(acc_ref)

    # ReLU on the packed bf16 block (half the HBM bytes / VALU passes of f32),
    # then the fused ReLU->AvgPool->Conv1x1->BNscale matmul, K-tiled,
    # accumulated in f32 VMEM scratch.
    x = jnp.maximum(x_ref[...], 0.0)                          # bf16 ReLU (VPU)
    acc_ref[...] += jnp.dot(x, wpc_ref[...],
                            preferred_element_type=jnp.float32)

    @pl.when(k == pl.num_programs(1) - 1)
    def _():
        # BN bias + ReLU epilogue (f32).
        h1 = jnp.maximum(acc_ref[...] + b1_ref[...], 0.0)     # (TN, 512)
        # Conv2d(128, 768, 2) over the 2x2 map (1x1 output) == one matmul of
        # the position-major im2col; weight rows pre-arranged (kh, kw, cin).
        h2 = jnp.dot(h1.astype(jnp.bfloat16), w2_ref[...],
                     preferred_element_type=jnp.float32)      # (TN, 768)
        h2 = jnp.maximum(h2, 0.0)                             # ReLU (no BN)
        # Classifier; classes padded to 128 lanes -> unmasked stores.
        out_ref[...] = (jnp.dot(h2.astype(jnp.bfloat16), wl_ref[...],
                                preferred_element_type=jnp.float32)
                        + bl_ref[...])


def auxiliary_head_imagenet(x, p, *, batch_block=None):
    """x: (N, C, 7, 7) f32 NCHW.  Returns (N, num_classes) f32 logits."""
    n, c, h, w = x.shape
    assert (h, w) == (7, 7), "AuxiliaryHeadImageNet requires a 7x7 input map"
    num_classes = p["num_classes"]
    ncls_pad = p["bl"].shape[1]
    feat = c * h * w
    feat_pad, tk, kt = _k_tiling(feat)
    assert p["wpc"].shape == (feat_pad, 4 * 128)

    if batch_block is None:
        # Large M tiles amortize the ~0.35us/step overhead; 256 fills the
        # 256-wide MXU M-dim on v6e/v7x.  Small-feat inputs are cheap -> wider.
        batch_block = 1024 if feat_pad <= 1024 else 256
    tn = min(batch_block, ((n + 7) // 8) * 8)        # multiple of 8 sublanes
    n_pad = ((n + tn - 1) // tn) * tn

    # bf16 input in HBM: halves the dominant DMA traffic and input VMEM.
    x2 = x.reshape(n, feat).astype(jnp.bfloat16)
    if n_pad != n or feat_pad != feat:
        x2 = jnp.pad(x2, ((0, n_pad - n), (0, feat_pad - feat)))

    # Scoped-VMEM budget: double-buffered inputs/output + f32 accumulator.
    vmem_bytes = (2 * tn * tk * 2            # x block (bf16)
                  + 2 * tk * 512 * 2         # wpc block (bf16)
                  + 2 * 512 * 768 * 2        # w2 (bf16)
                  + 2 * 768 * ncls_pad * 2   # wl (bf16)
                  + 2 * (512 + ncls_pad) * 4 # biases (f32)
                  + 2 * tn * ncls_pad * 4    # out block (f32)
                  + tn * 512 * 4)            # accumulator scratch (f32)
    vmem_limit = min(int(1.5 * vmem_bytes) + (8 << 20), 64 << 20)

    out = pl.pallas_call(
        aux_head_kernel,
        out_shape=jax.ShapeDtypeStruct((n_pad, ncls_pad), jnp.float32),
        grid_spec=pltpu.PrefetchScalarGridSpec(
            num_scalar_prefetch=0,
            grid=(n_pad // tn, kt),                    # K (reduction) last
            in_specs=[
                pl.BlockSpec((tn, tk), lambda i, k: (i, k)),
                pl.BlockSpec((tk, 4 * 128), lambda i, k: (k, 0)),
                pl.BlockSpec(p["b1"].shape, lambda i, k: (0, 0)),
                pl.BlockSpec(p["w2"].shape, lambda i, k: (0, 0)),
                pl.BlockSpec(p["wl"].shape, lambda i, k: (0, 0)),
                pl.BlockSpec(p["bl"].shape, lambda i, k: (0, 0)),
            ],
            out_specs=pl.BlockSpec((tn, ncls_pad), lambda i, k: (i, 0)),
            scratch_shapes=[pltpu.VMEM((tn, 4 * 128), jnp.float32)],
        ),
        compiler_params=pltpu.CompilerParams(
            dimension_semantics=("parallel", "arbitrary"),
            vmem_limit_bytes=vmem_limit),
    )(x2, p["wpc"], p["b1"], p["w2"], p["wl"], p["bl"])
    return out[:n, :num_classes]


def init_params(key, C, num_classes, eps=1e-5):
    ks = jax.random.split(key, 8)

    # Conv2d(C, 128, 1, bias=False): weight (128, C, 1, 1)
    conv1 = 0.1 * jax.random.normal(ks[0], (128, C, 1, 1), jnp.float32)
    # BatchNorm2d(128), eval mode with non-trivial running stats.
    gamma1 = 1.0 + 0.1 * jax.random.normal(ks[1], (128,), jnp.float32)
    beta1 = 0.1 * jax.random.normal(ks[2], (128,), jnp.float32)
    rmean1 = 0.1 * jax.random.normal(ks[3], (128,), jnp.float32)
    rvar1 = jax.random.uniform(ks[4], (128,), jnp.float32, 0.5, 1.5)
    # Conv2d(128, 768, 2, bias=False): weight (768, 128, 2, 2)
    conv2 = 0.05 * jax.random.normal(ks[5], (768, 128, 2, 2), jnp.float32)
    # Linear(768, num_classes)
    lw = 0.05 * jax.random.normal(ks[6], (num_classes, 768), jnp.float32)
    lb = 0.05 * jax.random.normal(ks[7], (num_classes,), jnp.float32)

    # ---- fold into kernel-side tensors (wrapper-side, done once) ----
    s1 = gamma1 / jnp.sqrt(rvar1 + eps)                 # BN scale
    b1 = beta1 - rmean1 * s1                            # BN bias
    w1f = conv1.reshape(128, C).T * s1[None, :]         # (C, 128), scale folded

    # AvgPool2d(5, stride=2, padding=0) on 7x7 -> 2x2: (49, 4) pooling matrix.
    # padding=0 => count_include_pad irrelevant; divisor is always 25.
    pm = [[0.0] * 4 for _ in range(49)]
    for ph in range(2):
        for pw in range(2):
            for r in range(2 * ph, 2 * ph + 5):
                for cc in range(2 * pw, 2 * pw + 5):
                    pm[r * 7 + cc][ph * 2 + pw] = 1.0 / 25.0
    pool_mat = jnp.asarray(pm, jnp.float32)             # (49, 4)

    # Fused ReLU->pool->conv1->BNscale weight: (C*49, 4*128),
    # wpc[c*49+i, pos*128+k] = pool_mat[i, pos] * w1f[c, k].
    feat = C * 49
    wpc = jnp.einsum("ip,ck->cipk", pool_mat, w1f).reshape(feat, 4 * 128)
    # Zero-pad the K dim to the K-tile multiple (unmasked vld, aligned MXU K).
    feat_pad, _, _ = _k_tiling(feat)
    if feat_pad != feat:
        wpc = jnp.pad(wpc, ((0, feat_pad - feat), (0, 0)))

    # Conv2 position-major im2col weight: row = (kh*2+kw)*128 + cin.
    w2m = jnp.transpose(conv2, (2, 3, 1, 0)).reshape(4 * 128, 768)

    # Classifier padded to a lane-dense 128-wide output.
    ncls_pad = ((num_classes + 127) // 128) * 128
    wl = jnp.zeros((768, ncls_pad), jnp.float32).at[:, :num_classes].set(lw.T)
    bl = jnp.zeros((1, ncls_pad), jnp.float32).at[0, :num_classes].set(lb)

    kernel_params = dict(
        wpc=wpc.astype(jnp.bfloat16),                   # matmul weights in bf16
        b1=jnp.tile(b1, 4).reshape(1, 4 * 128),         # f32 epilogue bias
        w2=w2m.astype(jnp.bfloat16),
        wl=wl.astype(jnp.bfloat16),
        bl=bl,                                          # f32 epilogue bias
        num_classes=num_classes,
    )
    raw_params = dict(conv1=conv1, gamma1=gamma1, beta1=beta1, rmean1=rmean1,
                      rvar1=rvar1, eps=eps, conv2=conv2,
                      linear_w=lw, linear_b=lb)
    return kernel_params, raw_params


def reference_forward(x, raw):
    """Pure-JAX f32 reference mirroring the PyTorch module (eval-mode BN)."""
    eps = raw["eps"]
    y = jnp.maximum(x, 0.0)
    y = lax.reduce_window(y, 0.0, lax.add,
                          (1, 1, 5, 5), (1, 1, 2, 2), "VALID") / 25.0
    y = lax.conv_general_dilated(y, raw["conv1"], (1, 1), "VALID",
                                 dimension_numbers=("NCHW", "OIHW", "NCHW"))
    s = raw["gamma1"] / jnp.sqrt(raw["rvar1"] + eps)
    b = raw["beta1"] - raw["rmean1"] * s
    y = y * s[None, :, None, None] + b[None, :, None, None]
    y = jnp.maximum(y, 0.0)
    y = lax.conv_general_dilated(y, raw["conv2"], (1, 1), "VALID",
                                 dimension_numbers=("NCHW", "OIHW", "NCHW"))
    y = jnp.maximum(y, 0.0)                       # (N, 768, 1, 1); no BN here
    y = y.reshape(y.shape[0], -1)
    return y @ raw["linear_w"].T + raw["linear_b"]


if __name__ == "__main__":
    key = jax.random.PRNGKey(0)
    kx, kp = jax.random.split(key)

    N, C, num_classes = 2, 4, 10
    # 7x7 is the spatial size NetworkImageNet feeds the auxiliary head.
    x = jax.random.normal(kx, (N, C, 7, 7), jnp.float32)

    kernel_params, raw_params = init_params(kp, C, num_classes)

    out = auxiliary_head_imagenet(x, kernel_params)
    out = jax.block_until_ready(out)

    ref = reference_forward(x, raw_params)
    assert out.shape == (N, num_classes)
    # Tolerance loosened vs pure-f32 because matmul operands (and the HBM
    # copy of x) are bf16; accumulation stays f32.
    assert jnp.allclose(out, ref, atol=5e-2, rtol=5e-2), \
        float(jnp.max(jnp.abs(out - ref)))

    print("KERNEL_OK")
</pallas_src>

<mosaic_0001>
module attributes {stable_mosaic.version = 11 : i64} {
  func.func @aux_head_kernel(%arg0: i32, %arg1: i32, %arg2: memref<8x256xbf16, #tpu.memory_space<vmem>>, %arg3: memref<256x512xbf16, #tpu.memory_space<vmem>>, %arg4: memref<1x512xf32, #tpu.memory_space<vmem>>, %arg5: memref<512x768xbf16, #tpu.memory_space<vmem>>, %arg6: memref<768x128xbf16, #tpu.memory_space<vmem>>, %arg7: memref<1x128xf32, #tpu.memory_space<vmem>>, %arg8: memref<8x128xf32, #tpu.memory_space<vmem>>, %arg9: memref<8x512xf32, #tpu.memory_space<vmem>>) attributes {dimension_semantics = [#tpu.dimension_semantics<parallel>, #tpu.dimension_semantics<arbitrary>], iteration_bounds = array<i64: 1, 1>, scalar_prefetch = 0 : i64, scratch_operands = 1 : i64, tpu.core_type = #tpu.core_type<tc>, window_params = [{transform_indices = @transform_0, window_bounds = array<i64: 8, 256>}, {transform_indices = @transform_1, window_bounds = array<i64: 256, 512>}, {pipeline_mode = #tpu.pipeline_mode<synchronous>, transform_indices = @transform_2, window_bounds = array<i64: 1, 512>}, {pipeline_mode = #tpu.pipeline_mode<synchronous>, transform_indices = @transform_3, window_bounds = array<i64: 512, 768>}, {pipeline_mode = #tpu.pipeline_mode<synchronous>, transform_indices = @transform_4, window_bounds = array<i64: 768, 128>}, {pipeline_mode = #tpu.pipeline_mode<synchronous>, transform_indices = @transform_5, window_bounds = array<i64: 1, 128>}, {transform_indices = @transform_6, window_bounds = array<i64: 8, 128>}]} {
    %c0_i32 = arith.constant 0 : i32
    %0 = arith.cmpi eq, %arg1, %c0_i32 : i32
    %1 = arith.extui %0 : i1 to i32
    %c0_i32_0 = arith.constant 0 : i32
    %2 = arith.cmpi ne, %1, %c0_i32_0 : i32
    scf.if %2 {
      %cst_11 = arith.constant 0.000000e+00 : f32
      %14 = vector.broadcast %cst_11 : f32 to vector<8x512xf32>
      %c0_12 = arith.constant 0 : index
      %c0_13 = arith.constant 0 : index
      %15 = vector.load %arg9[%c0_12, %c0_13] : memref<8x512xf32, #tpu.memory_space<vmem>>, vector<8x512xf32>
      tpu.vector_store %arg9[%c0_12, %c0_13], %14 {strides = array<i32>} : memref<8x512xf32, #tpu.memory_space<vmem>>, vector<8x512xf32>,
    } else {
    }
    %c0 = arith.constant 0 : index
    %c0_1 = arith.constant 0 : index
    %3 = vector.load %arg2[%c0, %c0_1] : memref<8x256xbf16, #tpu.memory_space<vmem>>, vector<8x256xbf16>
    %cst = arith.constant 0.000000e+00 : bf16
    %4 = vector.broadcast %cst : bf16 to vector<8x256xbf16>
    %5 = arith.maximumf %3, %4 : vector<8x256xbf16>
    %c0_2 = arith.constant 0 : index
    %c0_3 = arith.constant 0 : index
    %6 = vector.load %arg9[%c0_2, %c0_3] : memref<8x512xf32, #tpu.memory_space<vmem>>, vector<8x512xf32>
    %c0_4 = arith.constant 0 : index
    %c0_5 = arith.constant 0 : index
    %7 = vector.load %arg3[%c0_4, %c0_5] : memref<256x512xbf16, #tpu.memory_space<vmem>>, vector<256x512xbf16>
    %cst_6 = arith.constant dense<0.000000e+00> : vector<8x512xf32>
    %8 = tpu.matmul %5, %7, %cst_6 {dimension_numbers = #tpu.dot_dimension_numbers<[1], [0], [0], [1], [0, 0, 1, 1], [], []>} : vector<8x256xbf16>, vector<256x512xbf16>, vector<8x512xf32> -> vector<8x512xf32>
    %9 = arith.addf %6, %8 : vector<8x512xf32>
    %c0_7 = arith.constant 0 : index
    %c0_8 = arith.constant 0 : index
    %10 = vector.load %arg9[%c0_7, %c0_8] : memref<8x512xf32, #tpu.memory_space<vmem>>, vector<8x512xf32>
    tpu.vector_store %arg9[%c0_7, %c0_8], %9 {strides = array<i32>} : memref<8x512xf32, #tpu.memory_space<vmem>>, vector<8x512xf32>,
    %c0_i32_9 = arith.constant 0 : i32
    %11 = arith.cmpi eq, %arg1, %c0_i32_9 : i32
    %12 = arith.extui %11 : i1 to i32
    %c0_i32_10 = arith.constant 0 : i32
    %13 = arith.cmpi ne, %12, %c0_i32_10 : i32
    scf.if %13 {
      %c0_11 = arith.constant 0 : index
      %c0_12 = arith.constant 0 : index
      %14 = vector.load %arg9[%c0_11, %c0_12] : memref<8x512xf32, #tpu.memory_space<vmem>>, vector<8x512xf32>
      %c0_13 = arith.constant 0 : index
      %c0_14 = arith.constant 0 : index
      %15 = vector.load %arg4[%c0_13, %c0_14] : memref<1x512xf32, #tpu.memory_space<vmem>>, vector<1x512xf32>
      %16 = vector.broadcast %15 : vector<1x512xf32> to vector<8x512xf32>
      %17 = arith.addf %14, %16 : vector<8x512xf32>
      %cst_15 = arith.constant 0.000000e+00 : f32
      %18 = vector.broadcast %cst_15 : f32 to vector<8x512xf32>
      %19 = arith.maximumf %17, %18 : vector<8x512xf32>
      %20 = arith.truncf %19 : vector<8x512xf32> to vector<8x512xbf16>
      %c0_16 = arith.constant 0 : index
      %c0_17 = arith.constant 0 : index
      %21 = vector.load %arg5[%c0_16, %c0_17] : memref<512x768xbf16, #tpu.memory_space<vmem>>, vector<512x768xbf16>
      %cst_18 = arith.constant dense<0.000000e+00> : vector<8x768xf32>
      %22 = tpu.matmul %20, %21, %cst_18 {dimension_numbers = #tpu.dot_dimension_numbers<[1], [0], [0], [1], [0, 0, 1, 1], [], []>} : vector<8x512xbf16>, vector<512x768xbf16>, vector<8x768xf32> -> vector<8x768xf32>
      %cst_19 = arith.constant 0.000000e+00 : f32
      %23 = vector.broadcast %cst_19 : f32 to vector<8x768xf32>
      %24 = arith.maximumf %22, %23 : vector<8x768xf32>
      %25 = arith.truncf %24 : vector<8x768xf32> to vector<8x768xbf16>
      %c0_20 = arith.constant 0 : index
      %c0_21 = arith.constant 0 : index
      %26 = vector.load %arg6[%c0_20, %c0_21] : memref<768x128xbf16, #tpu.memory_space<vmem>>, vector<768x128xbf16>
      %cst_22 = arith.constant dense<0.000000e+00> : vector<8x128xf32>
      %27 = tpu.matmul %25, %26, %cst_22 {dimension_numbers = #tpu.dot_dimension_numbers<[1], [0], [0], [1], [0, 0, 1, 1], [], []>} : vector<8x768xbf16>, vector<768x128xbf16>, vector<8x128xf32> -> vector<8x128xf32>
      %c0_23 = arith.constant 0 : index
      %c0_24 = arith.constant 0 : index
      %28 = vector.load %arg7[%c0_23, %c0_24] : memref<1x128xf32, #tpu.memory_space<vmem>>, vector<1x128xf32>
      %29 = vector.broadcast %28 : vector<1x128xf32> to vector<8x128xf32>
      %30 = arith.addf %27, %29 : vector<8x128xf32>
      %c0_25 = arith.constant 0 : index
      %c0_26 = arith.constant 0 : index
      %31 = vector.load %arg8[%c0_25, %c0_26] : memref<8x128xf32, #tpu.memory_space<vmem>>, vector<8x128xf32>
      tpu.vector_store %arg8[%c0_25, %c0_26], %30 {strides = array<i32>} : memref<8x128xf32, #tpu.memory_space<vmem>>, vector<8x128xf32>,
    } else {
    }
    return
  }
  func.func @transform_0(%arg0: i32, %arg1: i32) -> (i32, i32) {
    %c0_i32 = arith.constant 0 : i32
    return %arg0, %arg1 : i32, i32
  }
  func.func @transform_1(%arg0: i32, %arg1: i32) -> (i32, i32) {
    %c0_i32 = arith.constant 0 : i32
    %c0_i32_0 = arith.constant 0 : i32
    return %arg1, %c0_i32 : i32, i32
  }
  func.func @transform_2(%arg0: i32, %arg1: i32) -> (i32, i32) {
    %c0_i32 = arith.constant 0 : i32
    %c0_i32_0 = arith.constant 0 : i32
    %c0_i32_1 = arith.constant 0 : i32
    return %c0_i32, %c0_i32_0 : i32, i32
  }
  func.func @transform_3(%arg0: i32, %arg1: i32) -> (i32, i32) {
    %c0_i32 = arith.constant 0 : i32
    %c0_i32_0 = arith.constant 0 : i32
    %c0_i32_1 = arith.constant 0 : i32
    return %c0_i32, %c0_i32_0 : i32, i32
  }
  func.func @transform_4(%arg0: i32, %arg1: i32) -> (i32, i32) {
    %c0_i32 = arith.constant 0 : i32
    %c0_i32_0 = arith.constant 0 : i32
    %c0_i32_1 = arith.constant 0 : i32
    return %c0_i32, %c0_i32_0 : i32, i32
  }
  func.func @transform_5(%arg0: i32, %arg1: i32) -> (i32, i32) {
    %c0_i32 = arith.constant 0 : i32
    %c0_i32_0 = arith.constant 0 : i32
    %c0_i32_1 = arith.constant 0 : i32
    return %c0_i32, %c0_i32_0 : i32, i32
  }
  func.func @transform_6(%arg0: i32, %arg1: i32) -> (i32, i32) {
    %c0_i32 = arith.constant 0 : i32
    %c0_i32_0 = arith.constant 0 : i32
    return %arg0, %c0_i32 : i32, i32
  }
}

</mosaic_0001>

<bundles_post_ra>
// kernel: tpu_custom_call.1
= control target key start
LH: loop header
LB: loop body
LE: loop exit
PB: predicated region body
PF: predicated region fallthrough
CT: control target
= control target key end

     0   :  { %11 = vsyncpa [#allocation4], 0  ;;  %s3654_s0 = inlined_call_operand.hbm [shape: bf16[8,256], index: 0, kind: input, shape index: {}]   ;;  %s3655_s1 = inlined_call_operand.hbm [shape: bf16[256,512], index: 1, kind: input, shape index: {}]   ;;  %s3656_s2 = inlined_call_operand.vmem [shape: f32[1,512], index: 2, kind: input, shape index: {}]   ;;  %s3657_s3 = inlined_call_operand.hbm [shape: bf16[512,768], index: 3, kind: input, shape index: {}]   ;;  %s3658_s4 = inlined_call_operand.hbm [shape: bf16[768,128], index: 4, kind: input, shape index: {}]   ;;  %s3659_s5 = inlined_call_operand.vmem [shape: f32[1,128], index: 5, kind: input, shape index: {}]   ;;  %s3660_s6 = inlined_call_operand.hbm [shape: f32[8,128], index: 6, kind: output, shape index: {}]  }
   0x1   :  { %12 = vsyncpa [#allocation7], 0 }
   0x2   :  { %13 = vsyncpa [#allocation10], 0 }
   0x3   :  { %14 = vsyncpa [#allocation5], 0  ;;  %s3500_s21 = smov [#allocation6]   ;;  %s3382_s25 = scalar_lea.hbm %s3655_s1, 8192 }
   0x4   :  { %s30_s22 = sshll.u32 %s3500_s21, 4  ;;  %p3383_p0 = scmp.ne.s32.totalorder %s3655_s1, %s3382_s25  ;;  %s31_s22 = int_to_ptr.vmem [resolvable:$true] %s30_s22 }
   0x5   :  { %p3386_p1 = scmp.lt.u32.totalorder %s3382_s25, %s3655_s1 }
   0x7   :  { %p3388_p2 = pnand %p3386_p1, %p3383_p0 }
   0x9   :  { %3391 = shalt.err (!%p3388_p2)
}
   0xa   :  { %s3392_s30 = scalar_lea.vmem %s31_s22, 8192  ;;  %p3397_p4 = scmp.lt.s32.totalorder %s31_s22, %s31_s22 }
   0xb   :  { %p3393_p3 = scmp.ne.s32.totalorder %s31_s22, %s3392_s30  ;;  %p3398_p5 = scmp.lt.s32.totalorder %s3392_s30, %s3392_s30 }
   0xd   :  { %p3399_p6 = por %p3398_p5, %p3397_p4 }
   0xf   :  { %p3400_p7 = pnand %p3399_p6, %p3393_p3 }
  0x11   :  { %3403 = shalt.err (!%p3400_p7)
}
  0x12   :  { %s3501_s7 = smov 256   ;;  %s3502_s8 = smov 16  }
  0x13   :  { %36 = dma.hbm_to_vmem [thread:$0]  %s3655_s1, 8192, %s31_s22, [#allocation7], %s3501_s7, %s3501_s7, %s3502_s8  }
  0x14   :  { %s3503_s11 = smov [#allocation3]   ;;  %s3504_s13 = smov [#allocation8]  }
  0x15   :  { %s21_s12 = sshll.u32 %s3503_s11, 4  ;;  %s44_s14 = sshll.u32 %s3504_s13, 4  ;;  %s22_s12 = int_to_ptr.vmem [resolvable:$true] %s21_s12  ;;  %s45_s14 = int_to_ptr.vmem [resolvable:$true] %s44_s14 }
  0x16   :  { %s3404_s17 = scalar_lea.hbm %s3654_s0, 128 }
  0x17   :  { %p3405_p8 = scmp.ne.s32.totalorder %s3654_s0, %s3404_s17  ;;  %p3408_p9 = scmp.lt.u32.totalorder %s3404_s17, %s3654_s0 }
  0x19   :  { %p3410_p10 = pnand %p3408_p9, %p3405_p8 }
  0x1b   :  { %3413 = shalt.err (!%p3410_p10)
}
  0x1c   :  { %s3414_s1 = scalar_lea.vmem %s22_s12, 128  ;;  %p3419_p12 = scmp.lt.s32.totalorder %s22_s12, %s22_s12 }
  0x1d   :  { %p3415_p11 = scmp.ne.s32.totalorder %s22_s12, %s3414_s1  ;;  %p3420_p13 = scmp.lt.s32.totalorder %s3414_s1, %s3414_s1 }
  0x1f   :  { %p3421_p0 = por %p3420_p13, %p3419_p12 }
  0x21   :  { %p3422_p1 = pnand %p3421_p0, %p3415_p11 }
  0x23   :  { %3425 = shalt.err (!%p3422_p1)
}
  0x24   :  { %24 = dma.hbm_to_vmem [thread:$0]  %s3654_s0, 128, %s22_s12, [#allocation4]  }
  0x25   :  { %s3426_s26 = scalar_lea.hbm %s3657_s3, 24576 }
  0x26   :  { %p3427_p2 = scmp.ne.s32.totalorder %s3657_s3, %s3426_s26  ;;  %p3430_p3 = scmp.lt.u32.totalorder %s3426_s26, %s3657_s3 }
  0x28   :  { %p3432_p4 = pnand %p3430_p3, %p3427_p2 }
  0x2a   :  { %3435 = shalt.err (!%p3432_p4)
}
  0x2b   :  { %s3436_s7 = scalar_lea.vmem %s45_s14, 24576  ;;  %p3441_p6 = scmp.lt.s32.totalorder %s45_s14, %s45_s14 }
  0x2c   :  { %p3437_p5 = scmp.ne.s32.totalorder %s45_s14, %s3436_s7  ;;  %p3442_p7 = scmp.lt.s32.totalorder %s3436_s7, %s3436_s7 }
  0x2e   :  { %p3443_p8 = por %p3442_p7, %p3441_p6 }
  0x30   :  { %p3444_p9 = pnand %p3443_p8, %p3437_p5 }
  0x32   :  { %3447 = shalt.err (!%p3444_p9)
}
  0x33   :  { %s3505_s0 = smov 384   ;;  %s3506_s8 = smov 24  }
  0x34   :  { %50 = dma.hbm_to_vmem [thread:$0]  %s3657_s3, 24576, %s45_s14, [#allocation7], %s3505_s0, %s3505_s0, %s3506_s8  }
  0x35   :  { %s3507_s11 = smov [#allocation9]   ;;  %s3448_s16 = scalar_lea.hbm %s3658_s4, 6144 }
  0x36   :  { %s56_s12 = sshll.u32 %s3507_s11, 4  ;;  %p3449_p10 = scmp.ne.s32.totalorder %s3658_s4, %s3448_s16  ;;  %s57_s12 = int_to_ptr.vmem [resolvable:$true] %s56_s12 }
  0x37   :  { %p3452_p11 = scmp.lt.u32.totalorder %s3448_s16, %s3658_s4 }
  0x39   :  { %p3454_p12 = pnand %p3452_p11, %p3449_p10 }
  0x3b   :  { %3457 = shalt.err (!%p3454_p12)
}
  0x3c   :  { %s3458_s21 = scalar_lea.vmem %s57_s12, 6144  ;;  %p3463_p0 = scmp.lt.s32.totalorder %s57_s12, %s57_s12 }
  0x3d   :  { %p3459_p13 = scmp.ne.s32.totalorder %s57_s12, %s3458_s21  ;;  %p3464_p1 = scmp.lt.s32.totalorder %s3458_s21, %s3458_s21 }
  0x3f   :  { %p3465_p2 = por %p3464_p1, %p3463_p0 }
  0x41   :  { %p3466_p3 = pnand %p3465_p2, %p3459_p13 }
  0x43   :  { %3469 = shalt.err (!%p3466_p3)
}
  0x44   :  { %s3508_s3 = smov 64   ;;  %s3509_s14 = smov 4  }
  0x45   :  { %62 = dma.hbm_to_vmem [thread:$0]  %s3658_s4, 6144, %s57_s12, [#allocation10], %s3508_s3, %s3508_s3, %s3509_s14  }
  0x46   :  { %3492 = dma.done.wait [#allocation4], 128  }
  0x47   :  { %3493 = vsyncadd [#allocation4], 4294967168 }
  0x48   :  { %3494 = dma.done.wait [#allocation7], 32768  }
  0x49   :  { %3495 = vsyncadd [#allocation7], 4294934528 }
  0x4a   :  { %3496 = dma.done.wait [#allocation10], 6144  }
  0x4b   :  { %3497 = vsyncadd [#allocation10], 4294961152  ;;  %v2950_v0 = vld [vmem:[#allocation6 + $0x4] ss:$16 sps:$4 sm:$0xff]   ;;  %v2952_v1 = vld [vmem:[#allocation6] ss:$16 sps:$4 sm:$0xff]  }
  0x4c   :  { %483 = vmatprep.subr.bf16.mxu0 %v2950_v0  ;;  %v2953_v2 = vld [vmem:[#allocation6 + $0x24] ss:$16 sps:$4 sm:$0xff]   ;;  %v2955_v3 = vld [vmem:[#allocation6 + $0x20] ss:$16 sps:$4 sm:$0xff]   ;;  %v2998_v14 = vld [vmem:[#allocation6 + $0xc] ss:$16 sps:$4 sm:$0xff]  }
  0x4d   :  { %484 = vmatpush1.bf16.msra.mxu0 %v2952_v1  ;;  %v2956_v4 = vld [vmem:[#allocation6 + $0x44] ss:$16 sps:$4 sm:$0xff]   ;;  %v2958_v5 = vld [vmem:[#allocation6 + $0x40] ss:$16 sps:$4 sm:$0xff]   ;;  %v3000_v15 = vld [vmem:[#allocation6 + $0x8] ss:$16 sps:$4 sm:$0xff]   ;;  %524 = vmatprep.subr.bf16.mxu1 %v2998_v14 }
  0x4e   :  { %485 = vmatprep.subr.bf16.mxu0 %v2953_v2  ;;  %v2959_v6 = vld [vmem:[#allocation6 + $0x64] ss:$16 sps:$4 sm:$0xff]   ;;  %v2961_v7 = vld [vmem:[#allocation6 + $0x60] ss:$16 sps:$4 sm:$0xff]   ;;  %v86_v16 = vld [vmem:[#allocation3] sm:$0xff]  ;;  %v3510_v17 = vmov 0   ;;  %525 = vmatpush1.bf16.msra.mxu1 %v3000_v15 }
  0x4f   :  { %v2962_v8 = vld [vmem:[#allocation6 + $0x84] ss:$16 sps:$4 sm:$0xff]   ;;  %v2964_v9 = vld [vmem:[#allocation6 + $0x80] ss:$16 sps:$4 sm:$0xff]   ;;  %v3595_v18 = vmax.bf16 %v3510_v17, %v86_v16  ;;  %v3001_v19 = vld [vmem:[#allocation6 + $0x2c] ss:$16 sps:$4 sm:$0xff]  }
  0x50   :  { %v2965_v10 = vld [vmem:[#allocation6 + $0xa4] ss:$16 sps:$4 sm:$0xff]   ;;  %v2967_v11 = vld [vmem:[#allocation6 + $0xa0] ss:$16 sps:$4 sm:$0xff]   ;;  %v3003_v22 = vld [vmem:[#allocation6 + $0x28] ss:$16 sps:$4 sm:$0xff]   ;;  %526 = vmatprep.subr.bf16.mxu1 %v3001_v19 }
  0x51   :  { %486 = vmatpush1.bf16.msra.mxu0 %v2955_v3  ;;  %v2968_v12 = vld [vmem:[#allocation6 + $0xc4] ss:$16 sps:$4 sm:$0xff]   ;;  %v2970_v13 = vld [vmem:[#allocation6 + $0xc0] ss:$16 sps:$4 sm:$0xff]   ;;  %v2554_v21 = vcombine.high %v3595_v18, %v3595_v18  ;;  %v3004_v23 = vld [vmem:[#allocation6 + $0x4c] ss:$16 sps:$4 sm:$0xff]   ;;  %v2553_v59 = vcombine.low %v3595_v18, %v3595_v18 }
  0x52   :  { %487 = vmatprep.subr.bf16.mxu0 %v2956_v4  ;;  %v2971_v20 = vld [vmem:[#allocation6 + $0xe4] ss:$16 sps:$4 sm:$0xff]   ;;  %v2973_v24 = vld [vmem:[#allocation6 + $0xe0] ss:$16 sps:$4 sm:$0xff]   ;;  %527 = vmatpush1.bf16.msra.mxu1 %v3003_v22  ;;  %v3006_v26 = vld [vmem:[#allocation6 + $0x48] ss:$16 sps:$4 sm:$0xff]  }
  0x53   :  { %515 = vmatprep.mubr.bf16.mxu0 %v2554_v21  ;;  %v2974_v25 = vld [vmem:[#allocation6 + $0x104] ss:$16 sps:$4 sm:$0xff]   ;;  %556 = vmatprep.mubr.bf16.mxu1 %v2554_v21  ;;  %v3007_v27 = vld [vmem:[#allocation6 + $0x6c] ss:$16 sps:$4 sm:$0xff]   ;;  %v2976_v28 = vld [vmem:[#allocation6 + $0x100] ss:$16 sps:$4 sm:$0xff]  }
  0x54   :  { %528 = vmatprep.subr.bf16.mxu1 %v3004_v23  ;;  %v2977_v29 = vld [vmem:[#allocation6 + $0x124] ss:$16 sps:$4 sm:$0xff]   ;;  %v3009_v30 = vld [vmem:[#allocation6 + $0x68] ss:$16 sps:$4 sm:$0xff]   ;;  %v3010_v31 = vld [vmem:[#allocation6 + $0x8c] ss:$16 sps:$4 sm:$0xff]  }
  0x55   :  { %488 = vmatpush1.bf16.msra.mxu0 %v2958_v5  ;;  %v2979_v32 = vld [vmem:[#allocation6 + $0x120] ss:$16 sps:$4 sm:$0xff]   ;;  %v2980_v33 = vld [vmem:[#allocation6 + $0x144] ss:$16 sps:$4 sm:$0xff]   ;;  %v3012_v34 = vld [vmem:[#allocation6 + $0x88] ss:$16 sps:$4 sm:$0xff]  }
  0x56   :  { %489 = vmatprep.subr.bf16.mxu0 %v2959_v6  ;;  %529 = vmatpush1.bf16.msra.mxu1 %v3006_v26  ;;  %v3013_v35 = vld [vmem:[#allocation6 + $0xac] ss:$16 sps:$4 sm:$0xff]   ;;  %v2982_v36 = vld [vmem:[#allocation6 + $0x140] ss:$16 sps:$4 sm:$0xff]   ;;  %v2983_v37 = vld [vmem:[#allocation6 + $0x164] ss:$16 sps:$4 sm:$0xff]  }
  0x57   :  { %530 = vmatprep.subr.bf16.mxu1 %v3007_v27  ;;  %v3015_v38 = vld [vmem:[#allocation6 + $0xa8] ss:$16 sps:$4 sm:$0xff]   ;;  %v3016_v39 = vld [vmem:[#allocation6 + $0xcc] ss:$16 sps:$4 sm:$0xff]   ;;  %v2985_v40 = vld [vmem:[#allocation6 + $0x160] ss:$16 sps:$4 sm:$0xff]  }
  0x58   :  { %v2986_v41 = vld [vmem:[#allocation6 + $0x184] ss:$16 sps:$4 sm:$0xff]   ;;  %v3018_v42 = vld [vmem:[#allocation6 + $0xc8] ss:$16 sps:$4 sm:$0xff]   ;;  %v3019_v43 = vld [vmem:[#allocation6 + $0xec] ss:$16 sps:$4 sm:$0xff]  }
  0x59   :  { %490 = vmatpush1.bf16.msra.mxu0 %v2961_v7  ;;  %v2988_v44 = vld [vmem:[#allocation6 + $0x180] ss:$16 sps:$4 sm:$0xff]   ;;  %v2989_v45 = vld [vmem:[#allocation6 + $0x1a4] ss:$16 sps:$4 sm:$0xff]   ;;  %v3021_v46 = vld [vmem:[#allocation6 + $0xe8] ss:$16 sps:$4 sm:$0xff]  }
  0x5a   :  { %491 = vmatprep.subr.bf16.mxu0 %v2962_v8  ;;  %531 = vmatpush1.bf16.msra.mxu1 %v3009_v30  ;;  %v3022_v47 = vld [vmem:[#allocation6 + $0x10c] ss:$16 sps:$4 sm:$0xff]   ;;  %v2991_v48 = vld [vmem:[#allocation6 + $0x1a0] ss:$16 sps:$4 sm:$0xff]   ;;  %v2992_v49 = vld [vmem:[#allocation6 + $0x1c4] ss:$16 sps:$4 sm:$0xff]  }
  0x5b   :  { %532 = vmatprep.subr.bf16.mxu1 %v3010_v31  ;;  %v3024_v50 = vld [vmem:[#allocation6 + $0x108] ss:$16 sps:$4 sm:$0xff]   ;;  %v3025_v51 = vld [vmem:[#allocation6 + $0x12c] ss:$16 sps:$4 sm:$0xff]   ;;  %v2994_v52 = vld [vmem:[#allocation6 + $0x1c0] ss:$16 sps:$4 sm:$0xff]  }
  0x5c   :  { %v2995_v53 = vld [vmem:[#allocation6 + $0x1e4] ss:$16 sps:$4 sm:$0xff]   ;;  %v3027_v54 = vld [vmem:[#allocation6 + $0x128] ss:$16 sps:$4 sm:$0xff]   ;;  %v3028_v55 = vld [vmem:[#allocation6 + $0x14c] ss:$16 sps:$4 sm:$0xff]  }
  0x5d   :  { %492 = vmatpush1.bf16.msra.mxu0 %v2964_v9  ;;  %v2997_v56 = vld [vmem:[#allocation6 + $0x1e0] ss:$16 sps:$4 sm:$0xff]   ;;  %v3048_v57 = vld [vmem:[#allocation8 + $0x4] ss:$24 sps:$4 sm:$0xff]   ;;  %v3030_v58 = vld [vmem:[#allocation6 + $0x148] ss:$16 sps:$4 sm:$0xff]  }
  0x5e   :  { %493 = vmatprep.subr.bf16.mxu0 %v2965_v10  ;;  %533 = vmatpush1.bf16.msra.mxu1 %v3012_v34  ;;  %v3031_v60 = vld [vmem:[#allocation6 + $0x16c] ss:$16 sps:$4 sm:$0xff]   ;;  %v3046_v61 = vld [vmem:[#allocation8] ss:$24 sps:$4 sm:$0xff]   ;;  %v3052_v1 = vld [vmem:[#allocation8 + $0x30] ss:$24 sps:$4 sm:$0xff]  }
  0x5f   :  { %534 = vmatprep.subr.bf16.mxu1 %v3013_v35  ;;  %v3054_v62 = vld [vmem:[#allocation8 + $0x34] ss:$24 sps:$4 sm:$0xff]   ;;  %v3033_v63 = vld [vmem:[#allocation6 + $0x168] ss:$16 sps:$4 sm:$0xff]   ;;  %v3060_v2 = vld [vmem:[#allocation8 + $0x64] ss:$24 sps:$4 sm:$0xff]  }
  0x60   :  { %v3034_v0 = vld [vmem:[#allocation6 + $0x18c] ss:$16 sps:$4 sm:$0xff]   ;;  %v3036_v3 = vld [vmem:[#allocation6 + $0x188] ss:$16 sps:$4 sm:$0xff]   ;;  %s3511_s25 = smov [#allocation11]  }
  0x61   :  { %494 = vmatpush1.bf16.msra.mxu0 %v2967_v11  ;;  %v3037_v4 = vld [vmem:[#allocation6 + $0x1ac] ss:$16 sps:$4 sm:$0xff]   ;;  %v3058_v5 = vld [vmem:[#allocation8 + $0x60] ss:$24 sps:$4 sm:$0xff]   ;;  %v3064_v9 = vld [vmem:[#allocation8 + $0x90] ss:$24 sps:$4 sm:$0xff]  }
  0x62   :  { %495 = vmatprep.subr.bf16.mxu0 %v2968_v12  ;;  %535 = vmatpush1.bf16.msra.mxu1 %v3015_v38  ;;  %v3066_v6 = vld [vmem:[#allocation8 + $0x94] ss:$24 sps:$4 sm:$0xff]   ;;  %v3039_v7 = vld [vmem:[#allocation6 + $0x1a8] ss:$16 sps:$4 sm:$0xff]   ;;  %v3072_v10 = vld [vmem:[#allocation8 + $0xc4] ss:$24 sps:$4 sm:$0xff]  }
  0x63   :  { %536 = vmatprep.subr.bf16.mxu1 %v3016_v39  ;;  %v3040_v8 = vld [vmem:[#allocation6 + $0x1cc] ss:$16 sps:$4 sm:$0xff]   ;;  %v3042_v11 = vld [vmem:[#allocation6 + $0x1c8] ss:$16 sps:$4 sm:$0xff]   ;;  %s2542_s26 = sshll.u32 %s3511_s25, 4  ;;  %s2543_s26 = int_to_ptr.vmem [resolvable:$true] %s2542_s26 }
  0x64   :  { %v3043_v12 = vld [vmem:[#allocation6 + $0x1ec] ss:$16 sps:$4 sm:$0xff]   ;;  %v3070_v14 = vld [vmem:[#allocation8 + $0xc0] ss:$24 sps:$4 sm:$0xff]   ;;  %v3076_v17 = vld [vmem:[#allocation8 + $0xf0] ss:$24 sps:$4 sm:$0xff]   ;;  %p3475_p5 = scmp.lt.s32.totalorder %s2543_s26, %s2543_s26 }
  0x65   :  { %496 = vmatpush1.bf16.msra.mxu0 %v2970_v13  ;;  %v3045_v13 = vld [vmem:[#allocation6 + $0x1e8] ss:$16 sps:$4 sm:$0xff]   ;;  %v3051_v15 = vld [vmem:[#allocation8 + $0xc] ss:$24 sps:$4 sm:$0xff]   ;;  %s3470_s27 = scalar_lea.vmem %s2543_s26, 128 }
  0x66   :  { %497 = vmatprep.subr.bf16.mxu0 %v2971_v20  ;;  %537 = vmatpush1.bf16.msra.mxu1 %v3018_v42  ;;  %v3078_v16 = vld [vmem:[#allocation8 + $0xf4] ss:$24 sps:$4 sm:$0xff]   ;;  %v3084_v18 = vld [vmem:[#allocation8 + $0x124] ss:$24 sps:$4 sm:$0xff]   ;;  %v3049_v19 = vld [vmem:[#allocation8 + $0x8] ss:$24 sps:$4 sm:$0xff]   ;;  %p3471_p4 = scmp.ne.s32.totalorder %s2543_s26, %s3470_s27  ;;  %p3476_p6 = scmp.lt.s32.totalorder %s3470_s27, %s3470_s27 }
  0x67   :  { %538 = vmatprep.subr.bf16.mxu1 %v3019_v43  ;;  %v3057_v20 = vld [vmem:[#allocation8 + $0x3c] ss:$24 sps:$4 sm:$0xff]   ;;  %v3082_v21 = vld [vmem:[#allocation8 + $0x120] ss:$24 sps:$4 sm:$0xff]  }
  0x68   :  { %v3090_v22 = vld [vmem:[#allocation8 + $0x154] ss:$24 sps:$4 sm:$0xff]   ;;  %v3055_v23 = vld [vmem:[#allocation8 + $0x38] ss:$24 sps:$4 sm:$0xff]   ;;  %v3096_v26 = vld [vmem:[#allocation8 + $0x184] ss:$24 sps:$4 sm:$0xff]   ;;  %p3477_p7 = por %p3476_p6, %p3475_p5 }
  0x69   :  { %498 = vmatpush1.bf16.msra.mxu0 %v2973_v24  ;;  %v3063_v24 = vld [vmem:[#allocation8 + $0x6c] ss:$24 sps:$4 sm:$0xff]   ;;  %v3061_v27 = vld [vmem:[#allocation8 + $0x68] ss:$24 sps:$4 sm:$0xff]   ;;  %v3067_v31 = vld [vmem:[#allocation8 + $0x98] ss:$24 sps:$4 sm:$0xff]  }
  0x6a   :  { %499 = vmatprep.subr.bf16.mxu0 %v2974_v25  ;;  %539 = vmatpush1.bf16.msra.mxu1 %v3021_v46  ;;  %v3088_v25 = vld [vmem:[#allocation8 + $0x150] ss:$24 sps:$4 sm:$0xff]   ;;  %v3102_v30 = vld [vmem:[#allocation8 + $0x1b4] ss:$24 sps:$4 sm:$0xff]   ;;  %v3108_v34 = vld [vmem:[#allocation8 + $0x1e4] ss:$24 sps:$4 sm:$0xff]   ;;  %p3478_p8 = pnand %p3477_p7, %p3471_p4 }
  0x6b   :  { %540 = vmatprep.subr.bf16.mxu1 %v3022_v47  ;;  %v3073_v35 = vld [vmem:[#allocation8 + $0xc8] ss:$24 sps:$4 sm:$0xff]   ;;  %v3114_v38 = vld [vmem:[#allocation8 + $0x214] ss:$24 sps:$4 sm:$0xff]   ;;  %v3079_v39 = vld [vmem:[#allocation8 + $0xf8] ss:$24 sps:$4 sm:$0xff]  }
  0x6c   :  { %v3120_v42 = vld [vmem:[#allocation8 + $0x244] ss:$24 sps:$4 sm:$0xff]   ;;  %v3085_v43 = vld [vmem:[#allocation8 + $0x128] ss:$24 sps:$4 sm:$0xff]   ;;  %v3126_v46 = vld [vmem:[#allocation8 + $0x274] ss:$24 sps:$4 sm:$0xff]  }
  0x6d   :  { %500 = vmatpush1.bf16.msra.mxu0 %v2976_v28  ;;  %v3069_v28 = vld [vmem:[#allocation8 + $0x9c] ss:$24 sps:$4 sm:$0xff]   ;;  %v3091_v47 = vld [vmem:[#allocation8 + $0x158] ss:$24 sps:$4 sm:$0xff]  }
  0x6e   :  { %501 = vmatprep.subr.bf16.mxu0 %v2977_v29  ;;  %541 = vmatpush1.bf16.msra.mxu1 %v3024_v50  ;;  %v3094_v29 = vld [vmem:[#allocation8 + $0x180] ss:$24 sps:$4 sm:$0xff]  }
  0x6f   :  { %542 = vmatprep.subr.bf16.mxu1 %v3025_v51  ;;  %v3097_v50 = vld [vmem:[#allocation8 + $0x188] ss:$24 sps:$4 sm:$0xff]   ;;  %v3105_v51 = vld [vmem:[#allocation8 + $0x1bc] ss:$24 sps:$4 sm:$0xff]  }
  0x71   :  { %502 = vmatpush1.bf16.msra.mxu0 %v2979_v32  ;;  %v3075_v32 = vld [vmem:[#allocation8 + $0xcc] ss:$24 sps:$4 sm:$0xff]  }
  0x72   :  { %503 = vmatprep.subr.bf16.mxu0 %v2980_v33  ;;  %543 = vmatpush1.bf16.msra.mxu1 %v3027_v54  ;;  %v3100_v33 = vld [vmem:[#allocation8 + $0x1b0] ss:$24 sps:$4 sm:$0xff]  }
  0x73   :  { %544 = vmatprep.subr.bf16.mxu1 %v3028_v55  ;;  %v3109_v54 = vld [vmem:[#allocation8 + $0x1e8] ss:$24 sps:$4 sm:$0xff]   ;;  %v3117_v55 = vld [vmem:[#allocation8 + $0x21c] ss:$24 sps:$4 sm:$0xff]  }
  0x75   :  { %504 = vmatpush1.bf16.msra.mxu0 %v2982_v36  ;;  %v3081_v36 = vld [vmem:[#allocation8 + $0xfc] ss:$24 sps:$4 sm:$0xff]  }
  0x76   :  { %505 = vmatprep.subr.bf16.mxu0 %v2983_v37  ;;  %545 = vmatpush1.bf16.msra.mxu1 %v3030_v58  ;;  %v3106_v37 = vld [vmem:[#allocation8 + $0x1e0] ss:$24 sps:$4 sm:$0xff]  }
  0x77   :  { %546 = vmatprep.subr.bf16.mxu1 %v3031_v60  ;;  %v3121_v58 = vld [vmem:[#allocation8 + $0x248] ss:$24 sps:$4 sm:$0xff]   ;;  %v3127_v60 = vld [vmem:[#allocation8 + $0x278] ss:$24 sps:$4 sm:$0xff]  }
  0x79   :  { %506 = vmatpush1.bf16.msra.mxu0 %v2985_v40  ;;  %v3087_v40 = vld [vmem:[#allocation8 + $0x12c] ss:$24 sps:$4 sm:$0xff]  }
  0x7a   :  { %507 = vmatprep.subr.bf16.mxu0 %v2986_v41  ;;  %547 = vmatpush1.bf16.msra.mxu1 %v3033_v63  ;;  %v3112_v41 = vld [vmem:[#allocation8 + $0x210] ss:$24 sps:$4 sm:$0xff]   ;;  %v3130_v63 = vld [vmem:[#allocation8 + $0x2a0] ss:$24 sps:$4 sm:$0xff]  }
  0x7b   :  { %548 = vmatprep.subr.bf16.mxu1 %v3034_v0  ;;  %v3133_v0 = vld [vmem:[#allocation8 + $0x2a8] ss:$24 sps:$4 sm:$0xff]  }
  0x7d   :  { %508 = vmatpush1.bf16.msra.mxu0 %v2988_v44  ;;  %v3093_v44 = vld [vmem:[#allocation8 + $0x15c] ss:$24 sps:$4 sm:$0xff]  }
  0x7e   :  { %509 = vmatprep.subr.bf16.mxu0 %v2989_v45  ;;  %549 = vmatpush1.bf16.msra.mxu1 %v3036_v3  ;;  %v3118_v45 = vld [vmem:[#allocation8 + $0x240] ss:$24 sps:$4 sm:$0xff]   ;;  %v3136_v3 = vld [vmem:[#allocation8 + $0x2d0] ss:$24 sps:$4 sm:$0xff]  }
  0x7f   :  { %550 = vmatprep.subr.bf16.mxu1 %v3037_v4  ;;  %v3139_v4 = vld [vmem:[#allocation8 + $0x2d8] ss:$24 sps:$4 sm:$0xff]  }
  0x81   :  { %510 = vmatpush1.bf16.msra.mxu0 %v2991_v48  ;;  %v3099_v48 = vld [vmem:[#allocation8 + $0x18c] ss:$24 sps:$4 sm:$0xff]  }
  0x82   :  { %511 = vmatprep.subr.bf16.mxu0 %v2992_v49  ;;  %551 = vmatpush1.bf16.msra.mxu1 %v3039_v7  ;;  %v3124_v49 = vld [vmem:[#allocation8 + $0x270] ss:$24 sps:$4 sm:$0xff]   ;;  %v582_v7 = vlaneseq }
  0x83   :  { %552 = vmatprep.subr.bf16.mxu1 %v3040_v8 }
  0x84   :  { %v3601_v8 = vshrl.u32 %v582_v7, 7  ;;  %v3204_v7 = vld [vmem:[#allocation8 + $0x4e4] ss:$24 sps:$4 sm:$0xff]  }
  0x85   :  { %512 = vmatpush1.bf16.msra.mxu0 %v2994_v52  ;;  %v3103_v52 = vld [vmem:[#allocation8 + $0x1b8] ss:$24 sps:$4 sm:$0xff]  }
  0x86   :  { %513 = vmatprep.subr.bf16.mxu0 %v2995_v53  ;;  %553 = vmatpush1.bf16.msra.mxu1 %v3042_v11  ;;  %v3111_v53 = vld [vmem:[#allocation8 + $0x1ec] ss:$24 sps:$4 sm:$0xff]   ;;  %v588_v11 = vsub.s32 1, %v3601_v8 }
  0x87   :  { %554 = vmatprep.subr.bf16.mxu1 %v3043_v12 }
  0x89   :  { %514 = vmatpush1.bf16.msra.mxu0 %v2997_v56  ;;  %v3115_v56 = vld [vmem:[#allocation8 + $0x218] ss:$24 sps:$4 sm:$0xff]  }
  0x8a   :  { %1766 = vmatprep.subr.bf16.mxu0 %v3048_v57  ;;  %555 = vmatpush1.bf16.msra.mxu1 %v3045_v13  ;;  %v3123_v57 = vld [vmem:[#allocation8 + $0x24c] ss:$24 sps:$4 sm:$0xff]  }
  0x8b   :  { %1848 = vmatprep.subr.bf16.mxu1 %v3051_v15 }
  0x8c   :  { %516 = vmatmul.mubr.bf16.vlgmr.msra.gmra.mrb[0].mxu0 %v2553_v59 }
  0x8d   :  { %1767 = vmatpush1.bf16.msra.mxu0 %v3046_v61  ;;  %557 = vmatmul.mubr.bf16.vlgmr.msra.gmra.mrb[0].mxu1 %v2553_v59  ;;  %v3129_v59 = vld [vmem:[#allocation8 + $0x27c] ss:$24 sps:$4 sm:$0xff]  }
  0x8e   :  { %1768 = vmatprep.subr.bf16.mxu0 %v3054_v62  ;;  %1849 = vmatpush1.bf16.msra.mxu1 %v3049_v19  ;;  %v3132_v61 = vld [vmem:[#allocation8 + $0x2a4] ss:$24 sps:$4 sm:$0xff]  }
  0x8f   :  { %1850 = vmatprep.subr.bf16.mxu1 %v3057_v20  ;;  %v3135_v62 = vld [vmem:[#allocation8 + $0x2ac] ss:$24 sps:$4 sm:$0xff]  }
  0x91   :  { %1769 = vmatpush1.bf16.msra.mxu0 %v3052_v1  ;;  %v3138_v1 = vld [vmem:[#allocation8 + $0x2d4] ss:$24 sps:$4 sm:$0xff]  }
  0x92   :  { %1770 = vmatprep.subr.bf16.mxu0 %v3060_v2  ;;  %1851 = vmatpush1.bf16.msra.mxu1 %v3055_v23  ;;  %v3141_v2 = vld [vmem:[#allocation8 + $0x2dc] ss:$24 sps:$4 sm:$0xff]   ;;  %v3142_v23 = vld [vmem:[#allocation8 + $0x300] ss:$24 sps:$4 sm:$0xff]  }
  0x93   :  { %1852 = vmatprep.subr.bf16.mxu1 %v3063_v24  ;;  %v3145_v24 = vld [vmem:[#allocation8 + $0x308] ss:$24 sps:$4 sm:$0xff]  }
  0x95   :  { %1771 = vmatpush1.bf16.msra.mxu0 %v3058_v5  ;;  %v3144_v5 = vld [vmem:[#allocation8 + $0x304] ss:$24 sps:$4 sm:$0xff]  }
  0x96   :  { %1772 = vmatprep.subr.bf16.mxu0 %v3066_v6  ;;  %1853 = vmatpush1.bf16.msra.mxu1 %v3061_v27  ;;  %v3147_v6 = vld [vmem:[#allocation8 + $0x30c] ss:$24 sps:$4 sm:$0xff]   ;;  %v3153_v27 = vld [vmem:[#allocation8 + $0x33c] ss:$24 sps:$4 sm:$0xff]  }
  0x97   :  { %1854 = vmatprep.subr.bf16.mxu1 %v3069_v28  ;;  %v3148_v28 = vld [vmem:[#allocation8 + $0x330] ss:$24 sps:$4 sm:$0xff]  }
  0x99   :  { %1773 = vmatpush1.bf16.msra.mxu0 %v3064_v9  ;;  %v584_v9 = vsub.s32 0, %v3601_v8 }
  0x9a   :  { %1774 = vmatprep.subr.bf16.mxu0 %v3072_v10  ;;  %1855 = vmatpush1.bf16.msra.mxu1 %v3067_v31  ;;  %v3607_v10 = vld [vmem:[%s3656_s2] sm:$0xf]  ;;  %v3159_v31 = vld [vmem:[#allocation8 + $0x36c] ss:$24 sps:$4 sm:$0xff]  }
  0x9b   :  { %1856 = vmatprep.subr.bf16.mxu1 %v3075_v32  ;;  %v585_v12 = vrot.slane %v3607_v10, %v584_v9  ;;  %v589_v13 = vrot.slane %v3607_v10, %v588_v11  ;;  %v3154_v32 = vld [vmem:[#allocation8 + $0x360] ss:$24 sps:$4 sm:$0xff]   ;;  %v3207_v9 = vld [vmem:[#allocation8 + $0x4ec] ss:$24 sps:$4 sm:$0xff]  }
  0x9c   :  { %v3202_v11 = vld [vmem:[#allocation8 + $0x4e0] ss:$24 sps:$4 sm:$0xff]  }
  0x9d   :  { %1775 = vmatpush1.bf16.msra.mxu0 %v3070_v14 }
  0x9e   :  { %1776 = vmatprep.subr.bf16.mxu0 %v3078_v16  ;;  %1857 = vmatpush1.bf16.msra.mxu1 %v3073_v35  ;;  %v3165_v35 = vld [vmem:[#allocation8 + $0x39c] ss:$24 sps:$4 sm:$0xff]  }
  0x9f   :  { %1858 = vmatprep.subr.bf16.mxu1 %v3081_v36  ;;  %v596_v36 = vsub.s32 3, %v3601_v8 }
  0xa1   :  { %1777 = vmatpush1.bf16.msra.mxu0 %v3076_v17 }
  0xa2   :  { %1778 = vmatprep.subr.bf16.mxu0 %v3084_v18  ;;  %1859 = vmatpush1.bf16.msra.mxu1 %v3079_v39  ;;  %v3168_v39 = vld [vmem:[#allocation8 + $0x3c4] ss:$24 sps:$4 sm:$0xff]  }
  0xa3   :  { %1860 = vmatprep.subr.bf16.mxu1 %v3087_v40  ;;  %v3171_v40 = vld [vmem:[#allocation8 + $0x3cc] ss:$24 sps:$4 sm:$0xff]  }
  0xa5   :  { %1779 = vmatpush1.bf16.msra.mxu0 %v3082_v21 }
  0xa6   :  { %1780 = vmatprep.subr.bf16.mxu0 %v3090_v22  ;;  %1861 = vmatpush1.bf16.msra.mxu1 %v3085_v43  ;;  %v3169_v43 = vld [vmem:[#allocation8 + $0x3c8] ss:$24 sps:$4 sm:$0xff]  }
  0xa7   :  { %1862 = vmatprep.subr.bf16.mxu1 %v3093_v44 }
  0xa9   :  { %1781 = vmatpush1.bf16.msra.mxu0 %v3088_v25 }
  0xaa   :  { %1782 = vmatprep.subr.bf16.mxu0 %v3096_v26  ;;  %1863 = vmatpush1.bf16.msra.mxu1 %v3091_v47  ;;  %v3150_v26 = vld [vmem:[#allocation8 + $0x334] ss:$24 sps:$4 sm:$0xff]  }
  0xab   :  { %1864 = vmatprep.subr.bf16.mxu1 %v3099_v48 }
  0xad   :  { %1783 = vmatpush1.bf16.msra.mxu0 %v3094_v29  ;;  %v3151_v29 = vld [vmem:[#allocation8 + $0x338] ss:$24 sps:$4 sm:$0xff]  }
  0xae   :  { %1784 = vmatprep.subr.bf16.mxu0 %v3102_v30  ;;  %1865 = vmatpush1.bf16.msra.mxu1 %v3097_v50  ;;  %v3156_v30 = vld [vmem:[#allocation8 + $0x364] ss:$24 sps:$4 sm:$0xff]  }
  0xaf   :  { %1866 = vmatprep.subr.bf16.mxu1 %v3105_v51  ;;  %v3172_v51 = vld [vmem:[#allocation8 + $0x3f0] ss:$24 sps:$4 sm:$0xff]  }
  0xb1   :  { %1785 = vmatpush1.bf16.msra.mxu0 %v3100_v33  ;;  %v3157_v33 = vld [vmem:[#allocation8 + $0x368] ss:$24 sps:$4 sm:$0xff]  }
  0xb2   :  { %1786 = vmatprep.subr.bf16.mxu0 %v3108_v34  ;;  %1867 = vmatpush1.bf16.msra.mxu1 %v3103_v52  ;;  %v3162_v34 = vld [vmem:[#allocation8 + $0x394] ss:$24 sps:$4 sm:$0xff]   ;;  %v3175_v52 = vld [vmem:[#allocation8 + $0x3f8] ss:$24 sps:$4 sm:$0xff]  }
  0xb3   :  { %1868 = vmatprep.subr.bf16.mxu1 %v3111_v53 }
  0xb5   :  { %1787 = vmatpush1.bf16.msra.mxu0 %v3106_v37  ;;  %v3160_v37 = vld [vmem:[#allocation8 + $0x390] ss:$24 sps:$4 sm:$0xff]  }
  0xb6   :  { %1788 = vmatprep.subr.bf16.mxu0 %v3114_v38  ;;  %1869 = vmatpush1.bf16.msra.mxu1 %v3109_v54  ;;  %v3163_v38 = vld [vmem:[#allocation8 + $0x398] ss:$24 sps:$4 sm:$0xff]   ;;  %v3180_v54 = vld [vmem:[#allocation8 + $0x424] ss:$24 sps:$4 sm:$0xff]  }
  0xb7   :  { %1870 = vmatprep.subr.bf16.mxu1 %v3117_v55  ;;  %v3183_v55 = vld [vmem:[#allocation8 + $0x42c] ss:$24 sps:$4 sm:$0xff]  }
  0xb9   :  { %1789 = vmatpush1.bf16.msra.mxu0 %v3112_v41  ;;  %v597_v41 = vrot.slane %v3607_v10, %v596_v36  ;;  %v3235_v36 = vld [vmem:[#allocation8 + $0x5d8] ss:$24 sps:$4 sm:$0xff]  }
  0xba   :  { %1790 = vmatprep.subr.bf16.mxu0 %v3120_v42  ;;  %1871 = vmatpush1.bf16.msra.mxu1 %v3115_v56  ;;  %v3166_v42 = vld [vmem:[#allocation8 + $0x3c0] ss:$24 sps:$4 sm:$0xff]  }
  0xbb   :  { %1872 = vmatprep.subr.bf16.mxu1 %v3123_v57  ;;  %v3178_v57 = vld [vmem:[#allocation8 + $0x420] ss:$24 sps:$4 sm:$0xff]  }
  0xbd   :  { %1791 = vmatpush1.bf16.msra.mxu0 %v3118_v45  ;;  %v3174_v45 = vld [vmem:[#allocation8 + $0x3f4] ss:$24 sps:$4 sm:$0xff]  }
  0xbe   :  { %1792 = vmatprep.subr.bf16.mxu0 %v3126_v46  ;;  %1873 = vmatpush1.bf16.msra.mxu1 %v3121_v58  ;;  %v3177_v46 = vld [vmem:[#allocation8 + $0x3fc] ss:$24 sps:$4 sm:$0xff]   ;;  %v3181_v58 = vld [vmem:[#allocation8 + $0x428] ss:$24 sps:$4 sm:$0xff]  }
  0xbf   :  { %1874 = vmatprep.subr.bf16.mxu1 %v3129_v59  ;;  %v3186_v59 = vld [vmem:[#allocation8 + $0x454] ss:$24 sps:$4 sm:$0xff]  }
  0xc1   :  { %1793 = vmatpush1.bf16.msra.mxu0 %v3124_v49 }
  0xc2   :  { %1875 = vmatpush1.bf16.msra.mxu1 %v3127_v60  ;;  %1794 = vmatprep.subr.bf16.mxu0 %v3132_v61  ;;  %v3189_v60 = vld [vmem:[#allocation8 + $0x45c] ss:$24 sps:$4 sm:$0xff]   ;;  %v3184_v61 = vld [vmem:[#allocation8 + $0x450] ss:$24 sps:$4 sm:$0xff]  }
  0xc3   :  { %1876 = vmatprep.subr.bf16.mxu1 %v3135_v62  ;;  %v3187_v62 = vld [vmem:[#allocation8 + $0x458] ss:$24 sps:$4 sm:$0xff]  }
  0xc5   :  { %1795 = vmatpush1.bf16.msra.mxu0 %v3130_v63  ;;  %v3192_v63 = vld [vmem:[#allocation8 + $0x484] ss:$24 sps:$4 sm:$0xff]  }
  0xc6   :  { %1877 = vmatpush1.bf16.msra.mxu1 %v3133_v0  ;;  %1796 = vmatprep.subr.bf16.mxu0 %v3138_v1  ;;  %v3195_v0 = vld [vmem:[#allocation8 + $0x48c] ss:$24 sps:$4 sm:$0xff]   ;;  %v3190_v1 = vld [vmem:[#allocation8 + $0x480] ss:$24 sps:$4 sm:$0xff]  }
  0xc7   :  { %1878 = vmatprep.subr.bf16.mxu1 %v3141_v2  ;;  %v3193_v2 = vld [vmem:[#allocation8 + $0x488] ss:$24 sps:$4 sm:$0xff]  }
  0xc9   :  { %1797 = vmatpush1.bf16.msra.mxu0 %v3136_v3  ;;  %v3198_v3 = vld [vmem:[#allocation8 + $0x4b4] ss:$24 sps:$4 sm:$0xff]  }
  0xca   :  { %1879 = vmatpush1.bf16.msra.mxu1 %v3139_v4  ;;  %1807 = vmatprep.subr.bf16.mxu0 %v3144_v5  ;;  %v3201_v4 = vld [vmem:[#allocation8 + $0x4bc] ss:$24 sps:$4 sm:$0xff]   ;;  %v3196_v5 = vld [vmem:[#allocation8 + $0x4b0] ss:$24 sps:$4 sm:$0xff]  }
  0xcb   :  { %1889 = vmatprep.subr.bf16.mxu1 %v3147_v6  ;;  %v3199_v6 = vld [vmem:[#allocation8 + $0x4b8] ss:$24 sps:$4 sm:$0xff]  }
 0x15f   :  { %v517_v14 = vpop.f32.mrb[0].mxu0 }
 0x160   :  { %v602_v15 = vadd.f32 %v585_v12, %v517_v14  ;;  %v519_v16 = vpop.f32.mrb[1].mxu0  ;;  %v3622_v44 = vpop.f32.mrb[0].mxu1  ;;  %v3205_v12 = vld [vmem:[#allocation8 + $0x4e8] ss:$24 sps:$4 sm:$0xff]   ;;  %v3213_v14 = vld [vmem:[#allocation8 + $0x51c] ss:$24 sps:$4 sm:$0xff]  }
 0x161   :  { %v603_v17 = vadd.f32 %v589_v13, %v519_v16  ;;  %v521_v18 = vpop.f32.mrb[2].mxu0  ;;  %v560_v47 = vpop.f32.mrb[1].mxu1  ;;  %v3210_v13 = vld [vmem:[#allocation8 + $0x514] ss:$24 sps:$4 sm:$0xff]   ;;  %v3211_v16 = vld [vmem:[#allocation8 + $0x518] ss:$24 sps:$4 sm:$0xff]  }
 0x162   :  { %v606_v19 = vmax.f32 %v602_v15, 0.0  ;;  %v522_v20 = vpop.f32.mrb[3].mxu0  ;;  %v605_v48 = vadd.f32 %v597_v41, %v560_v47  ;;  %v562_v49 = vpop.f32.mrb[2].mxu1  ;;  %v3208_v15 = vld [vmem:[#allocation8 + $0x510] ss:$24 sps:$4 sm:$0xff]   ;;  %v3334_v41 = vld [vmem:[#allocation9 + $0x40] sm:$0xff]  }
 0x163   :  { %v607_v21 = vmax.f32 %v603_v17, 0.0  ;;  %v563_v50 = vpop.f32.mrb[3].mxu1  ;;  %v3216_v17 = vld [vmem:[#allocation8 + $0x544] ss:$24 sps:$4 sm:$0xff]   ;;  %v3214_v20 = vld [vmem:[#allocation8 + $0x540] ss:$24 sps:$4 sm:$0xff]  }
 0x164   :  { %v3614_v25 = vpack.c.bf16 %v606_v19, %v606_v19  ;;  %v609_v53 = vmax.f32 %v605_v48, 0.0  ;;  %v3219_v18 = vld [vmem:[#allocation8 + $0x54c] ss:$24 sps:$4 sm:$0xff]   ;;  %v592_v19 = vsub.s32 2, %v3601_v8  ;;  %v3338_v47 = vld [vmem:[#allocation9 + $0x50] sm:$0xff]  }
 0x165   :  { %v3612_v22 = vpack.c.bf16 %v607_v21, %v607_v21  ;;  %v3217_v21 = vld [vmem:[#allocation8 + $0x548] ss:$24 sps:$4 sm:$0xff]   ;;  %v3249_v49 = vld [vmem:[#allocation8 + $0xa4] ss:$24 sps:$4 sm:$0xff]   ;;  %v3339_v50 = vld [vmem:[#allocation9 + $0x10] sm:$0xff]  }
 0x166   :  { %v3624_v56 = vpack.c.bf16 %v609_v53, %v609_v53  ;;  %v3244_v48 = vld [vmem:[#allocation8 + $0x70] ss:$24 sps:$4 sm:$0xff]   ;;  %v3341_v53 = vld [vmem:[#allocation9 + $0x18] sm:$0xff]  }
 0x167   :  { %1798 = vmatprep.mubr.bf16.mxu0 %v3612_v22  ;;  %1880 = vmatprep.mubr.bf16.mxu1 %v3612_v22 }
 0x168   :  { %1799 = vmatmul.mubr.bf16.vlgmr.msra.gmra.mrb[4].mxu0 %v3614_v25  ;;  %1881 = vmatmul.mubr.bf16.vlgmr.msra.gmra.mrb[4].mxu1 %v3614_v25 }
 0x169   :  { %1808 = vmatpush1.bf16.msra.mxu0 %v3142_v23  ;;  %1890 = vmatpush1.bf16.msra.mxu1 %v3145_v24  ;;  %v3222_v23 = vld [vmem:[#allocation8 + $0x574] ss:$24 sps:$4 sm:$0xff]  }
 0x16a   :  { %1809 = vmatprep.subr.bf16.mxu0 %v3150_v26  ;;  %1891 = vmatprep.subr.bf16.mxu1 %v3153_v27  ;;  %v3225_v24 = vld [vmem:[#allocation8 + $0x57c] ss:$24 sps:$4 sm:$0xff]   ;;  %v593_v26 = vrot.slane %v3607_v10, %v592_v19  ;;  %v3220_v27 = vld [vmem:[#allocation8 + $0x570] ss:$24 sps:$4 sm:$0xff]  }
 0x16b   :  { %1839 = vmatprep.mubr.bf16.mxu0 %v3624_v56  ;;  %1921 = vmatprep.mubr.bf16.mxu1 %v3624_v56  ;;  %v3232_v10 = vld [vmem:[#allocation8 + $0x5d0] ss:$24 sps:$4 sm:$0xff]  }
 0x16c   :  { %v604_v8 = vadd.f32 %v593_v26, %v3622_v44  ;;  %v3241_v44 = vld [vmem:[#allocation8 + $0x40] ss:$24 sps:$4 sm:$0xff]   ;;  %v3280_v19 = vld [vmem:[#allocation8 + $0x2b0] ss:$24 sps:$4 sm:$0xff]   ;;  %v3291_v26 = vld [vmem:[#allocation8 + $0x344] ss:$24 sps:$4 sm:$0xff]  }
 0x16d   :  { %1810 = vmatpush1.bf16.msra.mxu0 %v3148_v28  ;;  %1892 = vmatpush1.bf16.msra.mxu1 %v3151_v29  ;;  %v3223_v28 = vld [vmem:[#allocation8 + $0x578] ss:$24 sps:$4 sm:$0xff]   ;;  %v3228_v29 = vld [vmem:[#allocation8 + $0x5a4] ss:$24 sps:$4 sm:$0xff]  }
 0x16e   :  { %1811 = vmatprep.subr.bf16.mxu0 %v3156_v30  ;;  %1893 = vmatprep.subr.bf16.mxu1 %v3159_v31  ;;  %v3231_v30 = vld [vmem:[#allocation8 + $0x5ac] ss:$24 sps:$4 sm:$0xff]   ;;  %v3226_v31 = vld [vmem:[#allocation8 + $0x5a0] ss:$24 sps:$4 sm:$0xff]  }
 0x171   :  { %1812 = vmatpush1.bf16.msra.mxu0 %v3154_v32  ;;  %1894 = vmatpush1.bf16.msra.mxu1 %v3157_v33  ;;  %v3229_v32 = vld [vmem:[#allocation8 + $0x5a8] ss:$24 sps:$4 sm:$0xff]   ;;  %v3234_v33 = vld [vmem:[#allocation8 + $0x5d4] ss:$24 sps:$4 sm:$0xff]  }
 0x172   :  { %1813 = vmatprep.subr.bf16.mxu0 %v3162_v34  ;;  %1895 = vmatprep.subr.bf16.mxu1 %v3165_v35  ;;  %v3237_v34 = vld [vmem:[#allocation8 + $0x5dc] ss:$24 sps:$4 sm:$0xff]   ;;  %v608_v35 = vmax.f32 %v604_v8, 0.0  ;;  %v3295_v8 = vld [vmem:[#allocation8 + $0x3a0] ss:$24 sps:$4 sm:$0xff]  }
 0x175   :  { %1814 = vmatpush1.bf16.msra.mxu0 %v3160_v37  ;;  %1896 = vmatpush1.bf16.msra.mxu1 %v3163_v38  ;;  %v3240_v37 = vld [vmem:[#allocation8 + $0x14] ss:$24 sps:$4 sm:$0xff]   ;;  %v3631_v38 = vpack.c.bf16 %v608_v35, %v608_v35  ;;  %v3349_v35 = vld [vmem:[#allocation9 + $0x38] sm:$0xff]  }
 0x176   :  { %1815 = vmatprep.subr.bf16.mxu0 %v3168_v39  ;;  %1897 = vmatprep.subr.bf16.mxu1 %v3171_v40  ;;  %v3238_v39 = vld [vmem:[#allocation8 + $0x10] ss:$24 sps:$4 sm:$0xff]   ;;  %v3243_v40 = vld [vmem:[#allocation8 + $0x44] ss:$24 sps:$4 sm:$0xff]  }
 0x179   :  { %1816 = vmatpush1.bf16.msra.mxu0 %v3166_v42  ;;  %1898 = vmatpush1.bf16.msra.mxu1 %v3169_v43  ;;  %v3335_v42 = vld [vmem:[#allocation9] sm:$0xff]   ;;  %v3336_v43 = vld [vmem:[#allocation9 + $0x48] sm:$0xff]  }
 0x17a   :  { %1817 = vmatprep.subr.bf16.mxu0 %v3174_v45  ;;  %1899 = vmatprep.subr.bf16.mxu1 %v3177_v46  ;;  %v3246_v45 = vld [vmem:[#allocation8 + $0x74] ss:$24 sps:$4 sm:$0xff]  }
 0x17b   :  { %v3337_v46 = vld [vmem:[#allocation9 + $0x8] sm:$0xff]  }
 0x17d   :  { %1818 = vmatpush1.bf16.msra.mxu0 %v3172_v51  ;;  %1900 = vmatpush1.bf16.msra.mxu1 %v3175_v52  ;;  %v3340_v51 = vld [vmem:[#allocation9 + $0x58] sm:$0xff]  }
 0x17e   :  { %1819 = vmatprep.subr.bf16.mxu0 %v3180_v54  ;;  %1901 = vmatprep.subr.bf16.mxu1 %v3183_v55  ;;  %v3247_v52 = vld [vmem:[#allocation8 + $0xa0] ss:$24 sps:$4 sm:$0xff]   ;;  %v3250_v55 = vld [vmem:[#allocation8 + $0xd0] ss:$24 sps:$4 sm:$0xff]  }
 0x17f   :  { %v3342_v54 = vld [vmem:[#allocation9 + $0x60] sm:$0xff]  }
 0x181   :  { %1820 = vmatpush1.bf16.msra.mxu0 %v3178_v57  ;;  %1902 = vmatpush1.bf16.msra.mxu1 %v3181_v58  ;;  %v3255_v57 = vld [vmem:[#allocation8 + $0x104] ss:$24 sps:$4 sm:$0xff]  }
 0x182   :  { %1821 = vmatprep.subr.bf16.mxu0 %v3186_v59  ;;  %1903 = vmatprep.subr.bf16.mxu1 %v3189_v60  ;;  %v3343_v58 = vld [vmem:[#allocation9 + $0x20] sm:$0xff]   ;;  %v3344_v59 = vld [vmem:[#allocation9 + $0x68] sm:$0xff]  }
 0x183   :  { %v3253_v60 = vld [vmem:[#allocation8 + $0x100] ss:$24 sps:$4 sm:$0xff]  }
 0x185   :  { %1822 = vmatpush1.bf16.msra.mxu0 %v3184_v61  ;;  %1904 = vmatpush1.bf16.msra.mxu1 %v3187_v62  ;;  %v3258_v61 = vld [vmem:[#allocation8 + $0x134] ss:$24 sps:$4 sm:$0xff]  }
 0x186   :  { %1823 = vmatprep.subr.bf16.mxu0 %v3192_v63  ;;  %1905 = vmatprep.subr.bf16.mxu1 %v3195_v0  ;;  %v3345_v62 = vld [vmem:[#allocation9 + $0x28] sm:$0xff]   ;;  %v3346_v63 = vld [vmem:[#allocation9 + $0x70] sm:$0xff]  }
 0x187   :  { %v3256_v0 = vld [vmem:[#allocation8 + $0x130] ss:$24 sps:$4 sm:$0xff]  }
 0x189   :  { %1824 = vmatpush1.bf16.msra.mxu0 %v3190_v1  ;;  %1906 = vmatpush1.bf16.msra.mxu1 %v3193_v2  ;;  %v3261_v1 = vld [vmem:[#allocation8 + $0x164] ss:$24 sps:$4 sm:$0xff]   ;;  %v3347_v2 = vld [vmem:[#allocation9 + $0x30] sm:$0xff]  }
 0x18a   :  { %1825 = vmatprep.subr.bf16.mxu0 %v3198_v3  ;;  %1907 = vmatprep.subr.bf16.mxu1 %v3201_v4  ;;  %v3259_v3 = vld [vmem:[#allocation8 + $0x160] ss:$24 sps:$4 sm:$0xff]   ;;  %v3264_v4 = vld [vmem:[#allocation8 + $0x194] ss:$24 sps:$4 sm:$0xff]  }
 0x18d   :  { %1826 = vmatpush1.bf16.msra.mxu0 %v3196_v5  ;;  %1908 = vmatpush1.bf16.msra.mxu1 %v3199_v6  ;;  %v3262_v5 = vld [vmem:[#allocation8 + $0x190] ss:$24 sps:$4 sm:$0xff]   ;;  %v3267_v6 = vld [vmem:[#allocation8 + $0x1c4] ss:$24 sps:$4 sm:$0xff]  }
 0x18e   :  { %1827 = vmatprep.subr.bf16.mxu0 %v3204_v7  ;;  %1909 = vmatprep.subr.bf16.mxu1 %v3207_v9  ;;  %v3265_v7 = vld [vmem:[#allocation8 + $0x1c0] ss:$24 sps:$4 sm:$0xff]   ;;  %v3270_v9 = vld [vmem:[#allocation8 + $0x1f4] ss:$24 sps:$4 sm:$0xff]  }
 0x191   :  { %1828 = vmatpush1.bf16.msra.mxu0 %v3202_v11  ;;  %1910 = vmatpush1.bf16.msra.mxu1 %v3205_v12  ;;  %v3268_v11 = vld [vmem:[#allocation8 + $0x1f0] ss:$24 sps:$4 sm:$0xff]   ;;  %v3273_v12 = vld [vmem:[#allocation8 + $0x224] ss:$24 sps:$4 sm:$0xff]  }
 0x192   :  { %1829 = vmatprep.subr.bf16.mxu0 %v3210_v13  ;;  %1911 = vmatprep.subr.bf16.mxu1 %v3213_v14  ;;  %v3271_v13 = vld [vmem:[#allocation8 + $0x220] ss:$24 sps:$4 sm:$0xff]   ;;  %v3276_v14 = vld [vmem:[#allocation8 + $0x254] ss:$24 sps:$4 sm:$0xff]  }
 0x195   :  { %1830 = vmatpush1.bf16.msra.mxu0 %v3208_v15  ;;  %1912 = vmatpush1.bf16.msra.mxu1 %v3211_v16  ;;  %v3274_v15 = vld [vmem:[#allocation8 + $0x250] ss:$24 sps:$4 sm:$0xff]   ;;  %v3279_v16 = vld [vmem:[#allocation8 + $0x284] ss:$24 sps:$4 sm:$0xff]  }
 0x196   :  { %1831 = vmatprep.subr.bf16.mxu0 %v3216_v17  ;;  %1913 = vmatprep.subr.bf16.mxu1 %v3219_v18  ;;  %v3277_v17 = vld [vmem:[#allocation8 + $0x280] ss:$24 sps:$4 sm:$0xff]   ;;  %v3282_v18 = vld [vmem:[#allocation8 + $0x2b4] ss:$24 sps:$4 sm:$0xff]  }
 0x199   :  { %1832 = vmatpush1.bf16.msra.mxu0 %v3214_v20  ;;  %1914 = vmatpush1.bf16.msra.mxu1 %v3217_v21  ;;  %v3285_v20 = vld [vmem:[#allocation8 + $0x2e4] ss:$24 sps:$4 sm:$0xff]   ;;  %v3283_v21 = vld [vmem:[#allocation8 + $0x2e0] ss:$24 sps:$4 sm:$0xff]  }
 0x19a   :  { %1833 = vmatprep.subr.bf16.mxu0 %v3222_v23  ;;  %1915 = vmatprep.subr.bf16.mxu1 %v3225_v24  ;;  %v3288_v23 = vld [vmem:[#allocation8 + $0x314] ss:$24 sps:$4 sm:$0xff]   ;;  %v3286_v24 = vld [vmem:[#allocation8 + $0x310] ss:$24 sps:$4 sm:$0xff]  }
 0x19d   :  { %1834 = vmatpush1.bf16.msra.mxu0 %v3220_v27  ;;  %1916 = vmatpush1.bf16.msra.mxu1 %v3223_v28  ;;  %v3289_v27 = vld [vmem:[#allocation8 + $0x340] ss:$24 sps:$4 sm:$0xff]   ;;  %v3294_v28 = vld [vmem:[#allocation8 + $0x374] ss:$24 sps:$4 sm:$0xff]  }
 0x19e   :  { %1835 = vmatprep.subr.bf16.mxu0 %v3228_v29  ;;  %1917 = vmatprep.subr.bf16.mxu1 %v3231_v30  ;;  %v3292_v29 = vld [vmem:[#allocation8 + $0x370] ss:$24 sps:$4 sm:$0xff]   ;;  %v3297_v30 = vld [vmem:[#allocation8 + $0x3a4] ss:$24 sps:$4 sm:$0xff]  }
 0x1a1   :  { %1836 = vmatpush1.bf16.msra.mxu0 %v3226_v31  ;;  %1918 = vmatpush1.bf16.msra.mxu1 %v3229_v32  ;;  %v3300_v31 = vld [vmem:[#allocation8 + $0x3d4] ss:$24 sps:$4 sm:$0xff]   ;;  %v3298_v32 = vld [vmem:[#allocation8 + $0x3d0] ss:$24 sps:$4 sm:$0xff]  }
 0x1a2   :  { %1837 = vmatprep.subr.bf16.mxu0 %v3234_v33  ;;  %1919 = vmatprep.subr.bf16.mxu1 %v3237_v34  ;;  %v3303_v33 = vld [vmem:[#allocation8 + $0x404] ss:$24 sps:$4 sm:$0xff]   ;;  %v3306_v34 = vld [vmem:[#allocation8 + $0x434] ss:$24 sps:$4 sm:$0xff]  }
 0x1a5   :  { %1838 = vmatpush1.bf16.msra.mxu0 %v3232_v10  ;;  %1920 = vmatpush1.bf16.msra.mxu1 %v3235_v36  ;;  %v3304_v10 = vld [vmem:[#allocation8 + $0x430] ss:$24 sps:$4 sm:$0xff]   ;;  %v3309_v36 = vld [vmem:[#allocation8 + $0x464] ss:$24 sps:$4 sm:$0xff]  }
 0x1a6   :  { %1930 = vmatprep.subr.bf16.mxu0 %v3240_v37  ;;  %2860 = vmatprep.subr.bf16.mxu1 %v3334_v41  ;;  %v3350_v37 = vld [vmem:[#allocation9 + $0xc0] sm:$0xff]   ;;  %v3310_v41 = vld [vmem:[#allocation8 + $0x490] ss:$24 sps:$4 sm:$0xff]  }
 0x1a8   :  { %1840 = vmatmul.mubr.bf16.vlgmr.msra.gmra.mrb[4].mxu0 %v3631_v38  ;;  %1922 = vmatmul.mubr.bf16.vlgmr.msra.gmra.mrb[4].mxu1 %v3631_v38 }
 0x1a9   :  { %1931 = vmatpush1.bf16.msra.mxu0 %v3238_v39  ;;  %1962 = vmatprep.mubr.bf16.mxu0 %v3612_v22  ;;  %v3252_v22 = vld [vmem:[#allocation8 + $0xd4] ss:$24 sps:$4 sm:$0xff]   ;;  %v3307_v39 = vld [vmem:[#allocation8 + $0x460] ss:$24 sps:$4 sm:$0xff]  }
 0x1aa   :  { %1932 = vmatprep.subr.bf16.mxu0 %v3243_v40  ;;  %2861 = vmatpush3.bf16.msra.mxu1 %v3335_v42  ;;  %v3312_v40 = vld [vmem:[#allocation8 + $0x494] ss:$24 sps:$4 sm:$0xff]   ;;  %v3315_v42 = vld [vmem:[#allocation8 + $0x4c4] ss:$24 sps:$4 sm:$0xff]  }
 0x1ab   :  { %2862 = vmatprep.subr.bf16.mxu1 %v3336_v43  ;;  %v3313_v43 = vld [vmem:[#allocation8 + $0x4c0] ss:$24 sps:$4 sm:$0xff]  }
 0x1ad   :  { %1933 = vmatpush1.bf16.msra.mxu0 %v3241_v44  ;;  %v3318_v44 = vld [vmem:[#allocation8 + $0x4f4] ss:$24 sps:$4 sm:$0xff]  }
 0x1ae   :  { %1934 = vmatprep.subr.bf16.mxu0 %v3246_v45  ;;  %2863 = vmatpush3.bf16.msra.mxu1 %v3337_v46  ;;  %v3316_v45 = vld [vmem:[#allocation8 + $0x4f0] ss:$24 sps:$4 sm:$0xff]   ;;  %v3321_v46 = vld [vmem:[#allocation8 + $0x524] ss:$24 sps:$4 sm:$0xff]  }
 0x1af   :  { %2864 = vmatprep.subr.bf16.mxu1 %v3338_v47  ;;  %v3319_v47 = vld [vmem:[#allocation8 + $0x520] ss:$24 sps:$4 sm:$0xff]  }
 0x1b1   :  { %1935 = vmatpush1.bf16.msra.mxu0 %v3244_v48  ;;  %v3324_v48 = vld [vmem:[#allocation8 + $0x554] ss:$24 sps:$4 sm:$0xff]  }
 0x1b2   :  { %1936 = vmatprep.subr.bf16.mxu0 %v3249_v49  ;;  %2865 = vmatpush3.bf16.msra.mxu1 %v3339_v50  ;;  %v3322_v49 = vld [vmem:[#allocation8 + $0x550] ss:$24 sps:$4 sm:$0xff]   ;;  %v3327_v50 = vld [vmem:[#allocation8 + $0x584] ss:$24 sps:$4 sm:$0xff]  }
 0x1b3   :  { %2866 = vmatprep.subr.bf16.mxu1 %v3340_v51  ;;  %v3325_v51 = vld [vmem:[#allocation8 + $0x580] ss:$24 sps:$4 sm:$0xff]  }
 0x1b5   :  { %1937 = vmatpush1.bf16.msra.mxu0 %v3247_v52  ;;  %v3330_v52 = vld [vmem:[#allocation8 + $0x5b4] ss:$24 sps:$4 sm:$0xff]  }
 0x1b6   :  { %1938 = vmatprep.subr.bf16.mxu0 %v3252_v22  ;;  %2867 = vmatpush3.bf16.msra.mxu1 %v3341_v53  ;;  %v3328_v22 = vld [vmem:[#allocation8 + $0x5b0] ss:$24 sps:$4 sm:$0xff]   ;;  %v3333_v53 = vld [vmem:[#allocation8 + $0x5e4] ss:$24 sps:$4 sm:$0xff]  }
 0x1b7   :  { %2868 = vmatprep.subr.bf16.mxu1 %v3342_v54  ;;  %v3331_v54 = vld [vmem:[#allocation8 + $0x5e0] ss:$24 sps:$4 sm:$0xff]  }
 0x1b9   :  { %1939 = vmatpush1.bf16.msra.mxu0 %v3250_v55 }
 0x1ba   :  { %1940 = vmatprep.subr.bf16.mxu0 %v3255_v57  ;;  %2869 = vmatpush3.bf16.msra.mxu1 %v3343_v58 }
 0x1bb   :  { %2870 = vmatprep.subr.bf16.mxu1 %v3344_v59 }
 0x1bd   :  { %1941 = vmatpush1.bf16.msra.mxu0 %v3253_v60 }
 0x1be   :  { %1942 = vmatprep.subr.bf16.mxu0 %v3258_v61  ;;  %2871 = vmatpush3.bf16.msra.mxu1 %v3345_v62 }
 0x1bf   :  { %2872 = vmatprep.subr.bf16.mxu1 %v3346_v63 }
 0x1c1   :  { %1943 = vmatpush1.bf16.msra.mxu0 %v3256_v0 }
 0x1c2   :  { %1944 = vmatprep.subr.bf16.mxu0 %v3261_v1  ;;  %2873 = vmatpush3.bf16.msra.mxu1 %v3347_v2 }
 0x1c5   :  { %1945 = vmatpush1.bf16.msra.mxu0 %v3259_v3 }
 0x1c6   :  { %1946 = vmatprep.subr.bf16.mxu0 %v3264_v4  ;;  %v3351_v4 = vld [vmem:[#allocation9 + $0x80] sm:$0xff]  }
 0x1c9   :  { %1947 = vmatpush1.bf16.msra.mxu0 %v3262_v5 }
 0x1ca   :  { %1948 = vmatprep.subr.bf16.mxu0 %v3267_v6  ;;  %v3352_v6 = vld [vmem:[#allocation9 + $0xc8] sm:$0xff]  }
 0x1cd   :  { %1949 = vmatpush1.bf16.msra.mxu0 %v3265_v7 }
 0x1ce   :  { %1950 = vmatprep.subr.bf16.mxu0 %v3270_v9  ;;  %v3354_v9 = vld [vmem:[#allocation9 + $0xd0] sm:$0xff]  }
 0x1d1   :  { %1951 = vmatpush1.bf16.msra.mxu0 %v3268_v11  ;;  %v3355_v11 = vld [vmem:[#allocation9 + $0x90] sm:$0xff]  }
 0x1d2   :  { %1952 = vmatprep.subr.bf16.mxu0 %v3273_v12  ;;  %v3356_v12 = vld [vmem:[#allocation9 + $0xd8] sm:$0xff]  }
 0x1d5   :  { %1953 = vmatpush1.bf16.msra.mxu0 %v3271_v13  ;;  %v3357_v13 = vld [vmem:[#allocation9 + $0x98] sm:$0xff]  }
 0x1d6   :  { %1954 = vmatprep.subr.bf16.mxu0 %v3276_v14  ;;  %v3358_v14 = vld [vmem:[#allocation9 + $0xe0] sm:$0xff]  }
 0x1d9   :  { %1955 = vmatpush1.bf16.msra.mxu0 %v3274_v15  ;;  %v3359_v15 = vld [vmem:[#allocation9 + $0xa0] sm:$0xff]  }
 0x1da   :  { %1956 = vmatprep.subr.bf16.mxu0 %v3279_v16  ;;  %v3360_v16 = vld [vmem:[#allocation9 + $0xe8] sm:$0xff]  }
 0x1dd   :  { %1957 = vmatpush1.bf16.msra.mxu0 %v3277_v17  ;;  %v3361_v17 = vld [vmem:[#allocation9 + $0xa8] sm:$0xff]  }
 0x1de   :  { %1958 = vmatprep.subr.bf16.mxu0 %v3282_v18  ;;  %v3362_v18 = vld [vmem:[#allocation9 + $0xf0] sm:$0xff]  }
 0x1e1   :  { %1959 = vmatpush1.bf16.msra.mxu0 %v3280_v19  ;;  %v3363_v19 = vld [vmem:[#allocation9 + $0xb0] sm:$0xff]  }
 0x1e2   :  { %1960 = vmatprep.subr.bf16.mxu0 %v3285_v20  ;;  %v3364_v20 = vld [vmem:[#allocation9 + $0xf8] sm:$0xff]  }
 0x1e5   :  { %1961 = vmatpush1.bf16.msra.mxu0 %v3283_v21  ;;  %v3365_v21 = vld [vmem:[#allocation9 + $0xb8] sm:$0xff]  }
 0x1e6   :  { %1971 = vmatprep.subr.bf16.mxu0 %v3288_v23 }
 0x1e8   :  { %1963 = vmatmul.mubr.bf16.vlgmr.msra.gmra.mrb[8].mxu0 %v3614_v25  ;;  %v3301_v25 = vld [vmem:[#allocation8 + $0x400] ss:$24 sps:$4 sm:$0xff]  }
 0x1e9   :  { %1972 = vmatpush1.bf16.msra.mxu0 %v3286_v24  ;;  %2003 = vmatprep.mubr.bf16.mxu0 %v3624_v56  ;;  %v3348_v56 = vld [vmem:[#allocation9 + $0x78] sm:$0xff]   ;;  %v3366_v24 = vld [vmem:[#allocation9 + $0x140] sm:$0xff]  }
 0x1ea   :  { %1973 = vmatprep.subr.bf16.mxu0 %v3291_v26  ;;  %2874 = vmatprep.subr.bf16.mxu1 %v3348_v56  ;;  %v3367_v26 = vld [vmem:[#allocation9 + $0x100] sm:$0xff]   ;;  %v3377_v56 = vld [vmem:[#allocation9 + $0x128] sm:$0xff]  }
 0x1eb   :  { %2875 = vmatpush3.bf16.msra.mxu1 %v3349_v35  ;;  %v3378_v35 = vld [vmem:[#allocation9 + $0x170] sm:$0xff]  }
 0x1ec   :  { %2882 = vmatprep.subr.bf16.mxu1 %v3350_v37  ;;  %v3381_v37 = vld [vmem:[#allocation9 + $0x138] sm:$0xff]  }
 0x1ed   :  { %1974 = vmatpush1.bf16.msra.mxu0 %v3289_v27 }
 0x1ee   :  { %1975 = vmatprep.subr.bf16.mxu0 %v3294_v28  ;;  %v3368_v28 = vld [vmem:[#allocation9 + $0x148] sm:$0xff]  }
 0x1f1   :  { %1976 = vmatpush1.bf16.msra.mxu0 %v3292_v29  ;;  %v3369_v29 = vld [vmem:[#allocation9 + $0x108] sm:$0xff]  }
 0x1f2   :  { %1977 = vmatprep.subr.bf16.mxu0 %v3297_v30  ;;  %v3370_v30 = vld [vmem:[#allocation9 + $0x150] sm:$0xff]  }
 0x1f5   :  { %1978 = vmatpush1.bf16.msra.mxu0 %v3295_v8  ;;  %v3371_v8 = vld [vmem:[#allocation9 + $0x110] sm:$0xff]  }
 0x1f6   :  { %1979 = vmatprep.subr.bf16.mxu0 %v3300_v31  ;;  %v3372_v31 = vld [vmem:[#allocation9 + $0x158] sm:$0xff]  }
 0x1f9   :  { %1980 = vmatpush1.bf16.msra.mxu0 %v3298_v32  ;;  %v3373_v32 = vld [vmem:[#allocation9 + $0x118] sm:$0xff]  }
 0x1fa   :  { %1981 = vmatprep.subr.bf16.mxu0 %v3303_v33  ;;  %v3374_v33 = vld [vmem:[#allocation9 + $0x160] sm:$0xff]  }
 0x1fd   :  { %1982 = vmatpush1.bf16.msra.mxu0 %v3301_v25  ;;  %v3375_v25 = vld [vmem:[#allocation9 + $0x120] sm:$0xff]  }
 0x1fe   :  { %1983 = vmatprep.subr.bf16.mxu0 %v3306_v34  ;;  %v3376_v34 = vld [vmem:[#allocation9 + $0x168] sm:$0xff]  }
 0x201   :  { %1984 = vmatpush1.bf16.msra.mxu0 %v3304_v10  ;;  %v3379_v10 = vld [vmem:[#allocation9 + $0x130] sm:$0xff]  }
 0x202   :  { %1985 = vmatprep.subr.bf16.mxu0 %v3309_v36  ;;  %v3380_v36 = vld [vmem:[#allocation9 + $0x178] sm:$0xff]  }
 0x205   :  { %1986 = vmatpush1.bf16.msra.mxu0 %v3307_v39 }
 0x206   :  { %1987 = vmatprep.subr.bf16.mxu0 %v3312_v40 }
 0x209   :  { %1988 = vmatpush1.bf16.msra.mxu0 %v3310_v41 }
 0x20a   :  { %1989 = vmatprep.subr.bf16.mxu0 %v3315_v42 }
 0x20d   :  { %1990 = vmatpush1.bf16.msra.mxu0 %v3313_v43 }
 0x20e   :  { %1991 = vmatprep.subr.bf16.mxu0 %v3318_v44 }
 0x211   :  { %1992 = vmatpush1.bf16.msra.mxu0 %v3316_v45 }
 0x212   :  { %1993 = vmatprep.subr.bf16.mxu0 %v3321_v46 }
 0x215   :  { %1994 = vmatpush1.bf16.msra.mxu0 %v3319_v47 }
 0x216   :  { %1995 = vmatprep.subr.bf16.mxu0 %v3324_v48 }
 0x219   :  { %1996 = vmatpush1.bf16.msra.mxu0 %v3322_v49 }
 0x21a   :  { %1997 = vmatprep.subr.bf16.mxu0 %v3327_v50 }
 0x21d   :  { %1998 = vmatpush1.bf16.msra.mxu0 %v3325_v51 }
 0x21e   :  { %1999 = vmatprep.subr.bf16.mxu0 %v3330_v52  ;;  %v2811_v52 = vld [vmem:[%s3659_s5] ss:$0 sm:$0xff] }
 0x221   :  { %2000 = vmatpush1.bf16.msra.mxu0 %v3328_v22 }
 0x222   :  { %2001 = vmatprep.subr.bf16.mxu0 %v3333_v53 }
 0x225   :  { %2002 = vmatpush1.bf16.msra.mxu0 %v3331_v54 }
 0x228   :  { %2004 = vmatmul.mubr.bf16.vlgmr.msra.gmra.mrb[8].mxu0 %v3631_v38  ;;  %v3353_v38 = vld [vmem:[#allocation9 + $0x88] sm:$0xff]  }
 0x27b   :  { %v1841_v55 = vpop.f32.mrb[4].mxu0  ;;  %v1923_v57 = vpop.f32.mrb[4].mxu1 }
 0x27c   :  { %v2012_v58 = vmax.f32 %v1841_v55, 0.0  ;;  %v1843_v59 = vpop.f32.mrb[5].mxu0  ;;  %v1925_v60 = vpop.f32.mrb[5].mxu1  ;;  %v2014_v23 = vmax.f32 %v1923_v57, 0.0 }
 0x27d   :  { %v2013_v61 = vmax.f32 %v1843_v59, 0.0  ;;  %v2015_v62 = vmax.f32 %v1925_v60, 0.0  ;;  %v1845_v63 = vpop.f32.mrb[6].mxu0  ;;  %v1927_v0 = vpop.f32.mrb[6].mxu1 }
 0x27e   :  { %v1846_v1 = vpop.f32.mrb[7].mxu0  ;;  %v1928_v2 = vpop.f32.mrb[7].mxu1  ;;  %v2018_v5 = vpack.c.bf16 %v2012_v58, %v2012_v58  ;;  %v2020_v27 = vpack.c.bf16 %v2014_v23, %v2014_v23 }
 0x27f   :  { %v2019_v3 = vpack.c.bf16 %v2013_v61, %v2013_v61  ;;  %v2021_v7 = vpack.c.bf16 %v2015_v62, %v2015_v62 }
 0x281   :  { %2447 = vmatprep.mubr.bf16.mxu1 %v2019_v3 }
 0x282   :  { %2448 = vmatmul.mubr.bf16.vlgmr.msra.gmra.mrb[8].mxu1 %v2018_v5 }
 0x283   :  { %2883 = vmatpush3.bf16.msra.mxu1 %v3351_v4  ;;  %2487 = vmatprep.mubr.bf16.mxu1 %v2021_v7 }
 0x284   :  { %2884 = vmatprep.subr.bf16.mxu1 %v3352_v6 }
 0x287   :  { %2885 = vmatpush3.bf16.msra.mxu1 %v3353_v38 }
 0x288   :  { %2886 = vmatprep.subr.bf16.mxu1 %v3354_v9 }
 0x28b   :  { %2887 = vmatpush3.bf16.msra.mxu1 %v3355_v11 }
 0x28c   :  { %2888 = vmatprep.subr.bf16.mxu1 %v3356_v12 }
 0x28f   :  { %2889 = vmatpush3.bf16.msra.mxu1 %v3357_v13 }
 0x290   :  { %2890 = vmatprep.subr.bf16.mxu1 %v3358_v14 }
 0x293   :  { %2891 = vmatpush3.bf16.msra.mxu1 %v3359_v15 }
 0x294   :  { %2892 = vmatprep.subr.bf16.mxu1 %v3360_v16 }
 0x297   :  { %2893 = vmatpush3.bf16.msra.mxu1 %v3361_v17 }
 0x298   :  { %2894 = vmatprep.subr.bf16.mxu1 %v3362_v18 }
 0x29b   :  { %2895 = vmatpush3.bf16.msra.mxu1 %v3363_v19 }
 0x29c   :  { %2896 = vmatprep.subr.bf16.mxu1 %v3364_v20 }
 0x29f   :  { %2897 = vmatpush3.bf16.msra.mxu1 %v3365_v21 }
 0x2a0   :  { %2904 = vmatprep.subr.bf16.mxu1 %v3366_v24 }
 0x2a2   :  { %2488 = vmatmul.mubr.bf16.vlgmr.msra.gmra.mrb[12].mxu1 %v2020_v27 }
 0x2a3   :  { %2905 = vmatpush3.bf16.msra.mxu1 %v3367_v26 }
 0x2a4   :  { %2906 = vmatprep.subr.bf16.mxu1 %v3368_v28 }
 0x2a7   :  { %2907 = vmatpush3.bf16.msra.mxu1 %v3369_v29 }
 0x2a8   :  { %2908 = vmatprep.subr.bf16.mxu1 %v3370_v30 }
 0x2ab   :  { %2909 = vmatpush3.bf16.msra.mxu1 %v3371_v8 }
 0x2ac   :  { %2910 = vmatprep.subr.bf16.mxu1 %v3372_v31 }
 0x2af   :  { %2911 = vmatpush3.bf16.msra.mxu1 %v3373_v32 }
 0x2b0   :  { %2912 = vmatprep.subr.bf16.mxu1 %v3374_v33 }
 0x2b3   :  { %2913 = vmatpush3.bf16.msra.mxu1 %v3375_v25 }
 0x2b4   :  { %2914 = vmatprep.subr.bf16.mxu1 %v3376_v34 }
 0x2b7   :  { %2915 = vmatpush3.bf16.msra.mxu1 %v3377_v56 }
 0x2b8   :  { %2916 = vmatprep.subr.bf16.mxu1 %v3378_v35 }
 0x2bb   :  { %2917 = vmatpush3.bf16.msra.mxu1 %v3379_v10 }
 0x2bc   :  { %2918 = vmatprep.subr.bf16.mxu1 %v3380_v36 }
 0x2bf   :  { %2919 = vmatpush3.bf16.msra.mxu1 %v3381_v37 }
 0x2fb   :  { %v2005_v39 = vpop.f32.mrb[8].mxu0 }
 0x2fc   :  { %v2016_v40 = vmax.f32 %v2005_v39, 0.0  ;;  %v2007_v41 = vpop.f32.mrb[9].mxu0 }
 0x2fd   :  { %v2017_v42 = vmax.f32 %v2007_v41, 0.0  ;;  %v2009_v43 = vpop.f32.mrb[10].mxu0 }
 0x2fe   :  { %v2010_v44 = vpop.f32.mrb[11].mxu0  ;;  %v2022_v46 = vpack.c.bf16 %v2016_v40, %v2016_v40 }
 0x2ff   :  { %v2023_v45 = vpack.c.bf16 %v2017_v42, %v2017_v42 }
 0x301   :  { %2527 = vmatprep.mubr.bf16.mxu1 %v2023_v45 }
 0x302   :  { %2528 = vmatmul.mubr.bf16.vlgmr.msra.gmra.mrb[16].mxu1 %v2022_v46 }
 0x355   :  { %v2876_v47 = vpop.f32.mrb[8].mxu1 }
 0x356   :  { %v2877_v48 = vpop.f32.mrb[9].mxu1 }
 0x357   :  { %v2878_v49 = vadd.f32 %v2877_v48, %v2876_v47  ;;  %v2879_v50 = vpop.f32.mrb[10].mxu1 }
 0x358   :  { %v2880_v51 = vpop.f32.mrb[11].mxu1 }
 0x359   :  { %v2450_v54 = vadd.f32 %v2878_v49, %v2811_v52 }
 0x375   :  { %v2898_v22 = vpop.f32.mrb[12].mxu1 }
 0x376   :  { %v2899_v53 = vpop.f32.mrb[13].mxu1 }
 0x377   :  { %v2900_v55 = vadd.f32 %v2899_v53, %v2898_v22  ;;  %v2901_v57 = vpop.f32.mrb[14].mxu1 }
 0x378   :  { %v2902_v58 = vpop.f32.mrb[15].mxu1 }
 0x379   :  { %v2490_v59 = vadd.f32 %v2900_v55, %v2450_v54 }
 0x3d5   :  { %v2920_v60 = vpop.f32.mrb[16].mxu1 }
 0x3d6   :  { %v2921_v61 = vpop.f32.mrb[17].mxu1 }
 0x3d7   :  { %v2922_v62 = vadd.f32 %v2921_v61, %v2920_v60  ;;  %v2923_v63 = vpop.f32.mrb[18].mxu1 }
 0x3d8   :  { %v2924_v0 = vpop.f32.mrb[19].mxu1 }
 0x3d9   :  { %v2530_v1 = vadd.f32 %v2922_v62, %v2490_v59 }
 0x3db   :  { %2535 = vst [vmem:[#allocation11] sm:$0xff] %v2530_v1 }
 0x3dc   :  { %3481 = shalt.err (!%p3478_p8)
}
 0x3dd   :  { %s3482_s29 = scalar_lea.hbm %s3660_s6, 128 }
 0x3de   :  { %p3483_p9 = scmp.ne.s32.totalorder %s3660_s6, %s3482_s29  ;;  %p3486_p10 = scmp.lt.u32.totalorder %s3482_s29, %s3660_s6 }
 0x3e0   :  { %p3488_p11 = pnand %p3486_p10, %p3483_p9 }
 0x3e2   :  { %3491 = shalt.err (!%p3488_p11)
}
 0x3e3   :  { %2545 = dma.vmem_to_hbm [thread:$0]  %s2543_s26, 128, %s3660_s6, [#allocation5]  }
 0x3e4   :  { %3498 = dma.done.wait [#allocation5], 128  }
 0x3e5   :  { %3499 = vsyncadd [#allocation5], 4294967168 }
 0x3e6   :  { %2549 = vsyncpa [#allocation4], 1 }
 0x3e7   :  { %2550 = vsyncpa [#allocation7], 1 }
 0x3e8   :  { %2551 = vsyncpa [#allocation10], 1 }
 0x3e9   :  { %2552 = vsyncpa [#allocation5], 1 }

</bundles_post_ra>
